<compile_context>
chip_gen: v6e
topology: v6e:2x2x1
jax: 0.10.0
libtpu: 0.0.40
codegen_flags: <defaults>
</compile_context>

<pallas_src>
import functools

import jax
import jax.numpy as jnp
from jax.experimental import pallas as pl
from jax.experimental.pallas import tpu as pltpu


def _pick_tile(dim, target, mult):
    """Largest tile <= target that divides dim and is a multiple of mult;
    falls back to the full dim (always legal as a BlockSpec block)."""
    if dim <= target:
        return dim
    t = (target // mult) * mult
    while t >= mult:
        if dim % t == 0:
            return t
        t -= mult
    return dim


# ----------------------------------------------------------------------------
# Pallas kernels
# ----------------------------------------------------------------------------
def _matmul_bias_kernel(x_ref, w_ref, b_ref, o_ref):
    # x: f32 (tm, K) cast to bf16; w: bf16 (K, tn); accumulate in f32 on MXU.
    acc = jnp.dot(x_ref[...].astype(jnp.bfloat16), w_ref[...],
                  preferred_element_type=jnp.float32)
    o_ref[...] = (acc + b_ref[...]).astype(o_ref.dtype)


def matmul_bias(x, w, b, tm_target=256, tn_target=512):
    """x:[M,K] f32 @ w:[K,N] bf16 + b:[N] f32 -> [M,N] f32."""
    M, K = x.shape
    K2, N = w.shape
    assert K == K2
    tm = _pick_tile(M, tm_target, 8)
    tn = _pick_tile(N, tn_target, 128)
    # TODO(synk): add a K grid axis with an f32 VMEM accumulator for very
    # large contraction dims (K here is always hidden_dim, which fits).
    return pl.pallas_call(
        _matmul_bias_kernel,
        out_shape=jax.ShapeDtypeStruct((M, N), x.dtype),
        grid=(M // tm, N // tn),
        in_specs=[pl.BlockSpec((tm, K), lambda i, j: (i, 0)),
                  pl.BlockSpec((K, tn), lambda i, j: (0, j)),
                  pl.BlockSpec((1, tn), lambda i, j: (0, j))],
        out_specs=pl.BlockSpec((tm, tn), lambda i, j: (i, j)),
        compiler_params=pltpu.CompilerParams(
            dimension_semantics=("parallel", "parallel"),
            vmem_limit_bytes=64 * 1024 * 1024),
    )(x, w, b.reshape(1, N))


def _layernorm_kernel(x_ref, g_ref, b_ref, o_ref):
    x = x_ref[...]
    mu = jnp.mean(x, axis=-1, keepdims=True)
    var = jnp.mean(jnp.square(x - mu), axis=-1, keepdims=True)
    o_ref[...] = ((x - mu) * jax.lax.rsqrt(var + 1e-5) * g_ref[...]
                  + b_ref[...]).astype(o_ref.dtype)


def layernorm(x, g, b, tm_target=256):
    """x:[M,H] layer-normalized over last axis (eps=1e-5, like PyTorch)."""
    M, H = x.shape
    tm = _pick_tile(M, tm_target, 8)
    return pl.pallas_call(
        _layernorm_kernel,
        out_shape=jax.ShapeDtypeStruct((M, H), x.dtype),
        grid=(M // tm,),
        in_specs=[pl.BlockSpec((tm, H), lambda i: (i, 0)),
                  pl.BlockSpec((1, H), lambda i: (0, 0)),
                  pl.BlockSpec((1, H), lambda i: (0, 0))],
        out_specs=pl.BlockSpec((tm, H), lambda i: (i, 0)),
        compiler_params=pltpu.CompilerParams(
            dimension_semantics=("parallel",)),
    )(x, g.reshape(1, H), b.reshape(1, H))


def _attention_kernel(q_ref, k_ref, v_ref, o_ref, *, scale):
    # q/k/v blocks: (1, nH, S, dH) f32. Scale folded into q before the matmul.
    q = (q_ref[0] * scale).astype(jnp.bfloat16)        # (nH, S, dH)
    k = k_ref[0].astype(jnp.bfloat16)
    v = v_ref[0].astype(jnp.bfloat16)
    s = jnp.einsum("hqd,hkd->hqk", q, k,
                   preferred_element_type=jnp.float32)  # (nH, S, S)
    # NOTE: the reference module calls attn(x, x, x) with no mask, so no
    # causal mask is applied here either (matches PyTorch semantics).
    m = jnp.max(s, axis=-1, keepdims=True)
    p = jnp.exp(s - m)
    denom = jnp.sum(p, axis=-1, keepdims=True)
    p = p * pl.reciprocal(denom, approx=True)
    o = jnp.einsum("hqk,hkd->hqd", p.astype(jnp.bfloat16), v,
                   preferred_element_type=jnp.float32)
    o_ref[0] = o.astype(o_ref.dtype)


def attention(q, k, v):
    """q,k,v: [B, nH, S, dH] -> [B, nH, S, dH]; softmax(q k^T / sqrt(dH)) v.

    Heads are batched per grid step (grid over B only) so the MXU / lanes are
    fed nH*S rows at a time instead of S rows of a single head.
    """
    B, nH, S, dH = q.shape
    scale = 1.0 / float(dH) ** 0.5
    spec = pl.BlockSpec((1, nH, S, dH), lambda i: (i, 0, 0, 0))
    # TODO(synk): for long sequences add a KV grid axis with online (flash)
    # softmax so the (nH, S, S) score tile stays within VMEM.
    return pl.pallas_call(
        functools.partial(_attention_kernel, scale=scale),
        out_shape=jax.ShapeDtypeStruct((B, nH, S, dH), q.dtype),
        grid=(B,),
        in_specs=[spec, spec, spec],
        out_specs=spec,
        compiler_params=pltpu.CompilerParams(
            dimension_semantics=("parallel",)),
    )(q, k, v)


def _moe_expert_kernel(x_ref, w1_ref, b1_ref, w2_ref, b2_ref, cw_ref,
                       o_ref, acc_ref):
    e = pl.program_id(1)
    f = pl.program_id(2)
    ne = pl.num_programs(1)
    nf = pl.num_programs(2)

    @pl.when(jnp.logical_and(e == 0, f == 0))
    def _():
        acc_ref[...] = jnp.zeros_like(acc_ref)

    x = x_ref[...]                                              # (tm, H) f32
    h = (jnp.dot(x.astype(jnp.bfloat16), w1_ref[0],
                 preferred_element_type=jnp.float32)
         + b1_ref[0])                                           # (tm, tf) f32
    # TODO(synk): MoELayer source not provided; assuming an FFN expert with a
    # GELU (tanh approximation) activation and top-k renormalized routing.
    h = 0.5 * h * (1.0 + jnp.tanh(0.7978845608028654
                                  * (h + 0.044715 * h * h * h)))
    y = jnp.dot(h.astype(jnp.bfloat16), w2_ref[0],
                preferred_element_type=jnp.float32)             # (tm, H) f32
    # Add the second bias only once per expert (on the first F tile).
    y = y + (f == 0).astype(jnp.float32) * b2_ref[0]

    # Lane-dense combine-weight block (tm, E); select column e via a masked
    # lane reduction (avoids a last-dim-1 BlockSpec and masked partial loads).
    cw = cw_ref[...]                                            # (tm, E) f32
    sel = jax.lax.broadcasted_iota(jnp.int32, cw.shape, 1) == e
    cw_col = jnp.sum(jnp.where(sel, cw, 0.0), axis=-1, keepdims=True)

    acc_ref[...] += cw_col * y                                  # f32 scratch

    @pl.when(jnp.logical_and(e == ne - 1, f == nf - 1))
    def _():
        o_ref[...] = acc_ref[...].astype(o_ref.dtype)


def moe_experts_combine(x_flat, w1, b1, w2, b2, dense_w,
                        tm_target=128, tf_target=512):
    """x:[M,H] f32, w1:[E,H,F] bf16, b1:[E,1,F] f32, w2:[E,F,H] bf16,
    b2:[E,1,H] f32, dense_w:[M,E] f32 -> sum_e dense_w[:, e] * FFN_e(x)."""
    M, H = x_flat.shape
    E, _, F = w1.shape
    tm = _pick_tile(M, tm_target, 8)
    tf = _pick_tile(F, tf_target, 128)
    # TODO(synk): for E >> top_k, switch to grouped routing with
    # PrefetchScalarGridSpec so tokens only visit their assigned experts.
    return pl.pallas_call(
        _moe_expert_kernel,
        out_shape=jax.ShapeDtypeStruct((M, H), x_flat.dtype),
        grid=(M // tm, E, F // tf),
        in_specs=[pl.BlockSpec((tm, H), lambda i, e, f: (i, 0)),
                  pl.BlockSpec((1, H, tf), lambda i, e, f: (e, 0, f)),
                  pl.BlockSpec((1, 1, tf), lambda i, e, f: (e, 0, f)),
                  pl.BlockSpec((1, tf, H), lambda i, e, f: (e, f, 0)),
                  pl.BlockSpec((1, 1, H), lambda i, e, f: (e, 0, 0)),
                  pl.BlockSpec((tm, E), lambda i, e, f: (i, 0))],
        out_specs=pl.BlockSpec((tm, H), lambda i, e, f: (i, 0)),
        scratch_shapes=[pltpu.VMEM((tm, H), jnp.float32)],
        compiler_params=pltpu.CompilerParams(
            dimension_semantics=("parallel", "arbitrary", "arbitrary"),
            vmem_limit_bytes=64 * 1024 * 1024),
    )(x_flat, w1, b1, w2, b2, dense_w)


# ----------------------------------------------------------------------------
# Model forward (glue in JAX, compute in Pallas kernels above)
# ----------------------------------------------------------------------------
def mha_forward(x, p, num_heads):
    B, S, H = x.shape
    dH = H // num_heads
    x_flat = x.reshape(B * S, H)
    qkv = matmul_bias(x_flat, p["in_proj_w"], p["in_proj_b"])   # (BS, 3H)
    q, k, v = jnp.split(qkv, 3, axis=-1)

    # TODO(synk): the head split/merge transposes could be folded into the
    # attention BlockSpec index_maps to save an HBM round trip per layer.
    def to_heads(t):
        return t.reshape(B, S, num_heads, dH).transpose(0, 2, 1, 3)

    o = attention(to_heads(q), to_heads(k), to_heads(v))        # (B,nH,S,dH)
    o = o.transpose(0, 2, 1, 3).reshape(B * S, H)
    out = matmul_bias(o, p["out_proj_w"], p["out_proj_b"])
    return out.reshape(B, S, H)


def moe_forward(x_flat, p, top_k):
    M, H = x_flat.shape
    E = p["router_w"].shape[1]
    logits = matmul_bias(x_flat, p["router_w"], p["router_b"])  # (M, E)
    probs = jax.nn.softmax(logits, axis=-1)
    vals, idx = jax.lax.top_k(probs, top_k)
    vals = vals / jnp.sum(vals, axis=-1, keepdims=True)
    onehot = jax.nn.one_hot(idx, E, dtype=jnp.float32)          # (M, k, E)
    dense_w = jnp.einsum("mk,mke->me", vals, onehot)            # (M, E)
    return moe_experts_combine(x_flat, p["w1"], p["b1"], p["w2"], p["b2"],
                               dense_w)


def block_forward(x, p, num_heads, top_k):
    B, S, H = x.shape
    residual = x
    h = layernorm(x.reshape(B * S, H), p["ln1_g"], p["ln1_b"]).reshape(B, S, H)
    h = mha_forward(h, p["attn"], num_heads)
    x = h + residual
    residual = x
    h = layernorm(x.reshape(B * S, H), p["ln2_g"], p["ln2_b"])
    h = moe_forward(h, p["moe"], top_k).reshape(B, S, H)
    return h + residual


def moe_gpt_forward(params, input_ids, *, num_heads, top_k):
    B, S = input_ids.shape
    x = params["token_emb"][input_ids]                # (B, S, H) -- JAX gather
    x = x + params["pos_emb"][:S]
    for bp in params["blocks"]:
        x = block_forward(x, bp, num_heads, top_k)
    H = x.shape[-1]
    h = layernorm(x.reshape(B * S, H), params["lnf_g"], params["lnf_b"])
    logits = matmul_bias(h, params["lm_head_w"], params["lm_head_b"])
    return logits.reshape(B, S, -1)


# ----------------------------------------------------------------------------
# Deterministic parameter init (shapes follow MoEGPT.__init__).
# Matmul weights are stored pre-transposed as [K, N] and in bf16 so the
# kernels stream them straight onto the MXU with no per-step .T copies.
# ----------------------------------------------------------------------------
def init_params(key, vocab_size, hidden_dim, num_layers, num_heads,
                num_experts, top_k, max_seq_len):
    del num_heads, top_k
    ffn_dim = hidden_dim * 4
    keys = iter(jax.random.split(key, 64))

    def w(shape, scale=0.02, dtype=jnp.bfloat16):
        return (scale * jax.random.normal(next(keys), shape)).astype(dtype)

    params = {
        "token_emb": w((vocab_size, hidden_dim), dtype=jnp.float32),
        "pos_emb": jnp.zeros((max_seq_len, hidden_dim), jnp.float32),
        "lnf_g": jnp.ones((hidden_dim,), jnp.float32),
        "lnf_b": jnp.zeros((hidden_dim,), jnp.float32),
        "lm_head_w": w((hidden_dim, vocab_size)),            # [K, N] bf16
        "lm_head_b": jnp.zeros((vocab_size,), jnp.float32),
        "blocks": [],
    }
    for _ in range(num_layers):
        blk = {
            "ln1_g": jnp.ones((hidden_dim,), jnp.float32),
            "ln1_b": jnp.zeros((hidden_dim,), jnp.float32),
            "ln2_g": jnp.ones((hidden_dim,), jnp.float32),
            "ln2_b": jnp.zeros((hidden_dim,), jnp.float32),
            "attn": {
                "in_proj_w": w((hidden_dim, 3 * hidden_dim)),     # [K, N]
                "in_proj_b": jnp.zeros((3 * hidden_dim,), jnp.float32),
                "out_proj_w": w((hidden_dim, hidden_dim)),        # [K, N]
                "out_proj_b": jnp.zeros((hidden_dim,), jnp.float32),
            },
            "moe": {
                "router_w": w((hidden_dim, num_experts)),         # [K, N]
                "router_b": jnp.zeros((num_experts,), jnp.float32),
                "w1": w((num_experts, hidden_dim, ffn_dim)),
                "b1": jnp.zeros((num_experts, 1, ffn_dim), jnp.float32),
                "w2": w((num_experts, ffn_dim, hidden_dim)),
                "b2": jnp.zeros((num_experts, 1, hidden_dim), jnp.float32),
            },
        }
        params["blocks"].append(blk)
    return params


# ----------------------------------------------------------------------------
if __name__ == "__main__":
    vocab_size = 64
    hidden_dim = 32
    num_layers = 2
    num_heads = 4
    num_experts = 4
    top_k = 2
    max_seq_len = 16
    batch, seq = 2, 8

    root = jax.random.PRNGKey(0)
    pkey, dkey = jax.random.split(root)
    params = init_params(pkey, vocab_size, hidden_dim, num_layers, num_heads,
                         num_experts, top_k, max_seq_len)
    input_ids = jax.random.randint(dkey, (batch, seq), 0, vocab_size,
                                   dtype=jnp.int32)

    fwd = jax.jit(functools.partial(moe_gpt_forward, num_heads=num_heads,
                                    top_k=top_k))
    logits = fwd(params, input_ids)
    jax.block_until_ready(logits)
    assert logits.shape == (batch, seq, vocab_size)
    assert bool(jnp.all(jnp.isfinite(logits)))
    print("KERNEL_OK")
</pallas_src>

<mosaic_0001>
module attributes {stable_mosaic.version = 11 : i64} {
  func.func @_layernorm_kernel(%arg0: i32, %arg1: memref<16x32xf32, #tpu.memory_space<vmem>>, %arg2: memref<1x32xf32, #tpu.memory_space<vmem>>, %arg3: memref<1x32xf32, #tpu.memory_space<vmem>>, %arg4: memref<16x32xf32, #tpu.memory_space<vmem>>) attributes {dimension_semantics = [#tpu.dimension_semantics<parallel>], iteration_bounds = array<i64: 1>, scalar_prefetch = 0 : i64, scratch_operands = 0 : i64, tpu.core_type = #tpu.core_type<tc>, window_params = [{transform_indices = @transform_0, window_bounds = array<i64: 16, 32>}, {pipeline_mode = #tpu.pipeline_mode<synchronous>, transform_indices = @transform_1, window_bounds = array<i64: 1, 32>}, {pipeline_mode = #tpu.pipeline_mode<synchronous>, transform_indices = @transform_2, window_bounds = array<i64: 1, 32>}, {transform_indices = @transform_3, window_bounds = array<i64: 16, 32>}]} {
    %c0 = arith.constant 0 : index
    %c0_0 = arith.constant 0 : index
    %0 = vector.load %arg1[%c0, %c0_0] : memref<16x32xf32, #tpu.memory_space<vmem>>, vector<16x32xf32>
    %cst = arith.constant dense<0.000000e+00> : vector<16xf32>
    %1 = vector.multi_reduction <add>, %0, %cst [1] : vector<16x32xf32> to vector<16xf32>
    %2 = vector.shape_cast %1 : vector<16xf32> to vector<16x1xf32>
    %cst_1 = arith.constant 3.200000e+01 : f32
    %3 = vector.broadcast %cst_1 : f32 to vector<16x1xf32>
    %4 = arith.divf %2, %3 : vector<16x1xf32>
    %5 = vector.broadcast %4 : vector<16x1xf32> to vector<16x32xf32>
    %6 = arith.subf %0, %5 : vector<16x32xf32>
    %7 = arith.mulf %6, %6 : vector<16x32xf32>
    %cst_2 = arith.constant dense<0.000000e+00> : vector<16xf32>
    %8 = vector.multi_reduction <add>, %7, %cst_2 [1] : vector<16x32xf32> to vector<16xf32>
    %9 = vector.shape_cast %8 : vector<16xf32> to vector<16x1xf32>
    %cst_3 = arith.constant 3.200000e+01 : f32
    %10 = vector.broadcast %cst_3 : f32 to vector<16x1xf32>
    %11 = arith.divf %9, %10 : vector<16x1xf32>
    %12 = vector.broadcast %4 : vector<16x1xf32> to vector<16x32xf32>
    %13 = arith.subf %0, %12 : vector<16x32xf32>
    %cst_4 = arith.constant 9.99999974E-6 : f32
    %14 = vector.broadcast %cst_4 : f32 to vector<16x1xf32>
    %15 = arith.addf %11, %14 : vector<16x1xf32>
    %16 = math.rsqrt %15 : vector<16x1xf32>
    %17 = vector.broadcast %16 : vector<16x1xf32> to vector<16x32xf32>
    %18 = arith.mulf %13, %17 : vector<16x32xf32>
    %c0_5 = arith.constant 0 : index
    %c0_6 = arith.constant 0 : index
    %19 = vector.load %arg2[%c0_5, %c0_6] : memref<1x32xf32, #tpu.memory_space<vmem>>, vector<1x32xf32>
    %20 = vector.broadcast %19 : vector<1x32xf32> to vector<16x32xf32>
    %21 = arith.mulf %18, %20 : vector<16x32xf32>
    %c0_7 = arith.constant 0 : index
    %c0_8 = arith.constant 0 : index
    %22 = vector.load %arg3[%c0_7, %c0_8] : memref<1x32xf32, #tpu.memory_space<vmem>>, vector<1x32xf32>
    %23 = vector.broadcast %22 : vector<1x32xf32> to vector<16x32xf32>
    %24 = arith.addf %21, %23 : vector<16x32xf32>
    %c0_9 = arith.constant 0 : index
    %c0_10 = arith.constant 0 : index
    %25 = vector.load %arg4[%c0_9, %c0_10] : memref<16x32xf32, #tpu.memory_space<vmem>>, vector<16x32xf32>
    tpu.vector_store %arg4[%c0_9, %c0_10], %24 {strides = array<i32>} : memref<16x32xf32, #tpu.memory_space<vmem>>, vector<16x32xf32>,
    return
  }
  func.func @transform_0(%arg0: i32) -> (i32, i32) {
    %c0_i32 = arith.constant 0 : i32
    %c0_i32_0 = arith.constant 0 : i32
    return %arg0, %c0_i32 : i32, i32
  }
  func.func @transform_1(%arg0: i32) -> (i32, i32) {
    %c0_i32 = arith.constant 0 : i32
    %c0_i32_0 = arith.constant 0 : i32
    %c0_i32_1 = arith.constant 0 : i32
    return %c0_i32, %c0_i32_0 : i32, i32
  }
  func.func @transform_2(%arg0: i32) -> (i32, i32) {
    %c0_i32 = arith.constant 0 : i32
    %c0_i32_0 = arith.constant 0 : i32
    %c0_i32_1 = arith.constant 0 : i32
    return %c0_i32, %c0_i32_0 : i32, i32
  }
  func.func @transform_3(%arg0: i32) -> (i32, i32) {
    %c0_i32 = arith.constant 0 : i32
    %c0_i32_0 = arith.constant 0 : i32
    return %arg0, %c0_i32 : i32, i32
  }
}

module attributes {stable_mosaic.version = 11 : i64} {
  func.func @_matmul_bias_kernel(%arg0: i32, %arg1: i32, %arg2: memref<16x32xf32, #tpu.memory_space<vmem>>, %arg3: memref<32x96xbf16, #tpu.memory_space<vmem>>, %arg4: memref<1x96xf32, #tpu.memory_space<vmem>>, %arg5: memref<16x96xf32, #tpu.memory_space<vmem>>) attributes {dimension_semantics = [#tpu.dimension_semantics<parallel>, #tpu.dimension_semantics<parallel>], iteration_bounds = array<i64: 1, 1>, scalar_prefetch = 0 : i64, scratch_operands = 0 : i64, tpu.core_type = #tpu.core_type<tc>, window_params = [{transform_indices = @transform_0, window_bounds = array<i64: 16, 32>}, {transform_indices = @transform_1, window_bounds = array<i64: 32, 96>}, {transform_indices = @transform_2, window_bounds = array<i64: 1, 96>}, {transform_indices = @transform_3, window_bounds = array<i64: 16, 96>}]} {
    %c0 = arith.constant 0 : index
    %c0_0 = arith.constant 0 : index
    %0 = vector.load %arg2[%c0, %c0_0] : memref<16x32xf32, #tpu.memory_space<vmem>>, vector<16x32xf32>
    %1 = arith.truncf %0 : vector<16x32xf32> to vector<16x32xbf16>
    %c0_1 = arith.constant 0 : index
    %c0_2 = arith.constant 0 : index
    %2 = vector.load %arg3[%c0_1, %c0_2] : memref<32x96xbf16, #tpu.memory_space<vmem>>, vector<32x96xbf16>
    %cst = arith.constant dense<0.000000e+00> : vector<16x96xf32>
    %3 = tpu.matmul %1, %2, %cst {dimension_numbers = #tpu.dot_dimension_numbers<[1], [0], [0], [1], [0, 0, 1, 1], [], []>} : vector<16x32xbf16>, vector<32x96xbf16>, vector<16x96xf32> -> vector<16x96xf32>
    %c0_3 = arith.constant 0 : index
    %c0_4 = arith.constant 0 : index
    %4 = vector.load %arg4[%c0_3, %c0_4] : memref<1x96xf32, #tpu.memory_space<vmem>>, vector<1x96xf32>
    %5 = vector.broadcast %4 : vector<1x96xf32> to vector<16x96xf32>
    %6 = arith.addf %3, %5 : vector<16x96xf32>
    %c0_5 = arith.constant 0 : index
    %c0_6 = arith.constant 0 : index
    %7 = vector.load %arg5[%c0_5, %c0_6] : memref<16x96xf32, #tpu.memory_space<vmem>>, vector<16x96xf32>
    tpu.vector_store %arg5[%c0_5, %c0_6], %6 {strides = array<i32>} : memref<16x96xf32, #tpu.memory_space<vmem>>, vector<16x96xf32>,
    return
  }
  func.func @transform_0(%arg0: i32, %arg1: i32) -> (i32, i32) {
    %c0_i32 = arith.constant 0 : i32
    %c0_i32_0 = arith.constant 0 : i32
    return %arg0, %c0_i32 : i32, i32
  }
  func.func @transform_1(%arg0: i32, %arg1: i32) -> (i32, i32) {
    %c0_i32 = arith.constant 0 : i32
    %c0_i32_0 = arith.constant 0 : i32
    return %c0_i32, %arg1 : i32, i32
  }
  func.func @transform_2(%arg0: i32, %arg1: i32) -> (i32, i32) {
    %c0_i32 = arith.constant 0 : i32
    %c0_i32_0 = arith.constant 0 : i32
    return %c0_i32, %arg1 : i32, i32
  }
  func.func @transform_3(%arg0: i32, %arg1: i32) -> (i32, i32) {
    %c0_i32 = arith.constant 0 : i32
    return %arg0, %arg1 : i32, i32
  }
}

module attributes {stable_mosaic.version = 11 : i64} {
  func.func @_attention_kernel(%arg0: i32, %arg1: memref<1x4x8x8xf32, #tpu.memory_space<vmem>>, %arg2: memref<1x4x8x8xf32, #tpu.memory_space<vmem>>, %arg3: memref<1x4x8x8xf32, #tpu.memory_space<vmem>>, %arg4: memref<1x4x8x8xf32, #tpu.memory_space<vmem>>) attributes {dimension_semantics = [#tpu.dimension_semantics<parallel>], iteration_bounds = array<i64: 2>, scalar_prefetch = 0 : i64, scratch_operands = 0 : i64, tpu.core_type = #tpu.core_type<tc>, window_params = [{transform_indices = @transform_0, window_bounds = array<i64: 1, 4, 8, 8>}, {transform_indices = @transform_1, window_bounds = array<i64: 1, 4, 8, 8>}, {transform_indices = @transform_2, window_bounds = array<i64: 1, 4, 8, 8>}, {transform_indices = @transform_3, window_bounds = array<i64: 1, 4, 8, 8>}]} {
    %c0 = arith.constant 0 : index
    %c0_0 = arith.constant 0 : index
    %c0_1 = arith.constant 0 : index
    %c0_2 = arith.constant 0 : index
    %0 = vector.load %arg1[%c0, %c0_0, %c0_1, %c0_2] : memref<1x4x8x8xf32, #tpu.memory_space<vmem>>, vector<1x4x8x8xf32>
    %1 = vector.shape_cast %0 : vector<1x4x8x8xf32> to vector<4x8x8xf32>
    %cst = arith.constant 0.353553385 : f32
    %2 = vector.broadcast %cst : f32 to vector<4x8x8xf32>
    %3 = arith.mulf %1, %2 : vector<4x8x8xf32>
    %4 = arith.truncf %3 : vector<4x8x8xf32> to vector<4x8x8xbf16>
    %c0_3 = arith.constant 0 : index
    %c0_4 = arith.constant 0 : index
    %c0_5 = arith.constant 0 : index
    %c0_6 = arith.constant 0 : index
    %5 = vector.load %arg2[%c0_3, %c0_4, %c0_5, %c0_6] : memref<1x4x8x8xf32, #tpu.memory_space<vmem>>, vector<1x4x8x8xf32>
    %6 = vector.shape_cast %5 : vector<1x4x8x8xf32> to vector<4x8x8xf32>
    %7 = arith.truncf %6 : vector<4x8x8xf32> to vector<4x8x8xbf16>
    %c0_7 = arith.constant 0 : index
    %c0_8 = arith.constant 0 : index
    %c0_9 = arith.constant 0 : index
    %c0_10 = arith.constant 0 : index
    %8 = vector.load %arg3[%c0_7, %c0_8, %c0_9, %c0_10] : memref<1x4x8x8xf32, #tpu.memory_space<vmem>>, vector<1x4x8x8xf32>
    %9 = vector.shape_cast %8 : vector<1x4x8x8xf32> to vector<4x8x8xf32>
    %10 = arith.truncf %9 : vector<4x8x8xf32> to vector<4x8x8xbf16>
    "tpu.trace_start"() <{level = 10 : i32, message = "hqd,hkd->hqk"}> : () -> ()
    %cst_11 = arith.constant dense<0.000000e+00> : vector<4x8x8xf32>
    %11 = tpu.matmul %4, %7, %cst_11 {dimension_numbers = #tpu.dot_dimension_numbers<[2], [2], [1], [1], [0, 0, 0, 1, 1, 1], [0], [0]>} : vector<4x8x8xbf16>, vector<4x8x8xbf16>, vector<4x8x8xf32> -> vector<4x8x8xf32>
    "tpu.trace_stop"() : () -> ()
    %cst_12 = arith.constant dense<0xFF800000> : vector<4x8xf32>
    %12 = vector.multi_reduction <maximumf>, %11, %cst_12 [2] : vector<4x8x8xf32> to vector<4x8xf32>
    %13 = vector.shape_cast %12 : vector<4x8xf32> to vector<4x8x1xf32>
    %14 = vector.broadcast %13 : vector<4x8x1xf32> to vector<4x8x8xf32>
    %15 = arith.subf %11, %14 : vector<4x8x8xf32>
    %16 = math.exp %15 : vector<4x8x8xf32>
    %cst_13 = arith.constant dense<0.000000e+00> : vector<4x8xf32>
    %17 = vector.multi_reduction <add>, %16, %cst_13 [2] : vector<4x8x8xf32> to vector<4x8xf32>
    %18 = vector.shape_cast %17 : vector<4x8xf32> to vector<4x8x1xf32>
    %19 = tpu.reciprocal %18 {approx = true} : vector<4x8x1xf32> -> vector<4x8x1xf32>
    %20 = vector.broadcast %19 : vector<4x8x1xf32> to vector<4x8x8xf32>
    %21 = arith.mulf %16, %20 : vector<4x8x8xf32>
    %22 = arith.truncf %21 : vector<4x8x8xf32> to vector<4x8x8xbf16>
    "tpu.trace_start"() <{level = 10 : i32, message = "hqk,hkd->hqd"}> : () -> ()
    %cst_14 = arith.constant dense<0.000000e+00> : vector<4x8x8xf32>
    %23 = tpu.matmul %22, %10, %cst_14 {dimension_numbers = #tpu.dot_dimension_numbers<[2], [1], [1], [2], [0, 0, 0, 1, 1, 2], [0], [0]>} : vector<4x8x8xbf16>, vector<4x8x8xbf16>, vector<4x8x8xf32> -> vector<4x8x8xf32>
    "tpu.trace_stop"() : () -> ()
    %c0_15 = arith.constant 0 : index
    %c0_16 = arith.constant 0 : index
    %c0_17 = arith.constant 0 : index
    %c0_18 = arith.constant 0 : index
    %24 = vector.load %arg4[%c0_15, %c0_16, %c0_17, %c0_18] : memref<1x4x8x8xf32, #tpu.memory_space<vmem>>, vector<1x4x8x8xf32>
    %25 = vector.shape_cast %24 : vector<1x4x8x8xf32> to vector<4x8x8xf32>
    %26 = vector.shape_cast %23 : vector<4x8x8xf32> to vector<1x4x8x8xf32>
    tpu.vector_store %arg4[%c0_15, %c0_16, %c0_17, %c0_18], %26 {strides = array<i32>} : memref<1x4x8x8xf32, #tpu.memory_space<vmem>>, vector<1x4x8x8xf32>,
    return
  }
  func.func @transform_0(%arg0: i32) -> (i32, i32, i32, i32) {
    %c0_i32 = arith.constant 0 : i32
    %c0_i32_0 = arith.constant 0 : i32
    %c0_i32_1 = arith.constant 0 : i32
    %c0_i32_2 = arith.constant 0 : i32
    return %arg0, %c0_i32, %c0_i32_0, %c0_i32_1 : i32, i32, i32, i32
  }
  func.func @transform_1(%arg0: i32) -> (i32, i32, i32, i32) {
    %c0_i32 = arith.constant 0 : i32
    %c0_i32_0 = arith.constant 0 : i32
    %c0_i32_1 = arith.constant 0 : i32
    %c0_i32_2 = arith.constant 0 : i32
    return %arg0, %c0_i32, %c0_i32_0, %c0_i32_1 : i32, i32, i32, i32
  }
  func.func @transform_2(%arg0: i32) -> (i32, i32, i32, i32) {
    %c0_i32 = arith.constant 0 : i32
    %c0_i32_0 = arith.constant 0 : i32
    %c0_i32_1 = arith.constant 0 : i32
    %c0_i32_2 = arith.constant 0 : i32
    return %arg0, %c0_i32, %c0_i32_0, %c0_i32_1 : i32, i32, i32, i32
  }
  func.func @transform_3(%arg0: i32) -> (i32, i32, i32, i32) {
    %c0_i32 = arith.constant 0 : i32
    %c0_i32_0 = arith.constant 0 : i32
    %c0_i32_1 = arith.constant 0 : i32
    %c0_i32_2 = arith.constant 0 : i32
    return %arg0, %c0_i32, %c0_i32_0, %c0_i32_1 : i32, i32, i32, i32
  }
}

module attributes {stable_mosaic.version = 11 : i64} {
  func.func @_matmul_bias_kernel(%arg0: i32, %arg1: i32, %arg2: memref<16x32xf32, #tpu.memory_space<vmem>>, %arg3: memref<32x32xbf16, #tpu.memory_space<vmem>>, %arg4: memref<1x32xf32, #tpu.memory_space<vmem>>, %arg5: memref<16x32xf32, #tpu.memory_space<vmem>>) attributes {dimension_semantics = [#tpu.dimension_semantics<parallel>, #tpu.dimension_semantics<parallel>], iteration_bounds = array<i64: 1, 1>, scalar_prefetch = 0 : i64, scratch_operands = 0 : i64, tpu.core_type = #tpu.core_type<tc>, window_params = [{transform_indices = @transform_0, window_bounds = array<i64: 16, 32>}, {transform_indices = @transform_1, window_bounds = array<i64: 32, 32>}, {transform_indices = @transform_2, window_bounds = array<i64: 1, 32>}, {transform_indices = @transform_3, window_bounds = array<i64: 16, 32>}]} {
    %c0 = arith.constant 0 : index
    %c0_0 = arith.constant 0 : index
    %0 = vector.load %arg2[%c0, %c0_0] : memref<16x32xf32, #tpu.memory_space<vmem>>, vector<16x32xf32>
    %1 = arith.truncf %0 : vector<16x32xf32> to vector<16x32xbf16>
    %c0_1 = arith.constant 0 : index
    %c0_2 = arith.constant 0 : index
    %2 = vector.load %arg3[%c0_1, %c0_2] : memref<32x32xbf16, #tpu.memory_space<vmem>>, vector<32x32xbf16>
    %cst = arith.constant dense<0.000000e+00> : vector<16x32xf32>
    %3 = tpu.matmul %1, %2, %cst {dimension_numbers = #tpu.dot_dimension_numbers<[1], [0], [0], [1], [0, 0, 1, 1], [], []>} : vector<16x32xbf16>, vector<32x32xbf16>, vector<16x32xf32> -> vector<16x32xf32>
    %c0_3 = arith.constant 0 : index
    %c0_4 = arith.constant 0 : index
    %4 = vector.load %arg4[%c0_3, %c0_4] : memref<1x32xf32, #tpu.memory_space<vmem>>, vector<1x32xf32>
    %5 = vector.broadcast %4 : vector<1x32xf32> to vector<16x32xf32>
    %6 = arith.addf %3, %5 : vector<16x32xf32>
    %c0_5 = arith.constant 0 : index
    %c0_6 = arith.constant 0 : index
    %7 = vector.load %arg5[%c0_5, %c0_6] : memref<16x32xf32, #tpu.memory_space<vmem>>, vector<16x32xf32>
    tpu.vector_store %arg5[%c0_5, %c0_6], %6 {strides = array<i32>} : memref<16x32xf32, #tpu.memory_space<vmem>>, vector<16x32xf32>,
    return
  }
  func.func @transform_0(%arg0: i32, %arg1: i32) -> (i32, i32) {
    %c0_i32 = arith.constant 0 : i32
    %c0_i32_0 = arith.constant 0 : i32
    return %arg0, %c0_i32 : i32, i32
  }
  func.func @transform_1(%arg0: i32, %arg1: i32) -> (i32, i32) {
    %c0_i32 = arith.constant 0 : i32
    %c0_i32_0 = arith.constant 0 : i32
    return %c0_i32, %arg1 : i32, i32
  }
  func.func @transform_2(%arg0: i32, %arg1: i32) -> (i32, i32) {
    %c0_i32 = arith.constant 0 : i32
    %c0_i32_0 = arith.constant 0 : i32
    return %c0_i32, %arg1 : i32, i32
  }
  func.func @transform_3(%arg0: i32, %arg1: i32) -> (i32, i32) {
    %c0_i32 = arith.constant 0 : i32
    return %arg0, %arg1 : i32, i32
  }
}

module attributes {stable_mosaic.version = 11 : i64} {
  func.func @_matmul_bias_kernel(%arg0: i32, %arg1: i32, %arg2: memref<16x32xf32, #tpu.memory_space<vmem>>, %arg3: memref<32x4xbf16, #tpu.memory_space<vmem>>, %arg4: memref<1x4xf32, #tpu.memory_space<vmem>>, %arg5: memref<16x4xf32, #tpu.memory_space<vmem>>) attributes {dimension_semantics = [#tpu.dimension_semantics<parallel>, #tpu.dimension_semantics<parallel>], iteration_bounds = array<i64: 1, 1>, scalar_prefetch = 0 : i64, scratch_operands = 0 : i64, tpu.core_type = #tpu.core_type<tc>, window_params = [{transform_indices = @transform_0, window_bounds = array<i64: 16, 32>}, {transform_indices = @transform_1, window_bounds = array<i64: 32, 4>}, {transform_indices = @transform_2, window_bounds = array<i64: 1, 4>}, {transform_indices = @transform_3, window_bounds = array<i64: 16, 4>}]} {
    %c0 = arith.constant 0 : index
    %c0_0 = arith.constant 0 : index
    %0 = vector.load %arg2[%c0, %c0_0] : memref<16x32xf32, #tpu.memory_space<vmem>>, vector<16x32xf32>
    %1 = arith.truncf %0 : vector<16x32xf32> to vector<16x32xbf16>
    %c0_1 = arith.constant 0 : index
    %c0_2 = arith.constant 0 : index
    %2 = vector.load %arg3[%c0_1, %c0_2] : memref<32x4xbf16, #tpu.memory_space<vmem>>, vector<32x4xbf16>
    %cst = arith.constant dense<0.000000e+00> : vector<16x4xf32>
    %3 = tpu.matmul %1, %2, %cst {dimension_numbers = #tpu.dot_dimension_numbers<[1], [0], [0], [1], [0, 0, 1, 1], [], []>} : vector<16x32xbf16>, vector<32x4xbf16>, vector<16x4xf32> -> vector<16x4xf32>
    %c0_3 = arith.constant 0 : index
    %c0_4 = arith.constant 0 : index
    %4 = vector.load %arg4[%c0_3, %c0_4] : memref<1x4xf32, #tpu.memory_space<vmem>>, vector<1x4xf32>
    %5 = vector.broadcast %4 : vector<1x4xf32> to vector<16x4xf32>
    %6 = arith.addf %3, %5 : vector<16x4xf32>
    %c0_5 = arith.constant 0 : index
    %c0_6 = arith.constant 0 : index
    %7 = vector.load %arg5[%c0_5, %c0_6] : memref<16x4xf32, #tpu.memory_space<vmem>>, vector<16x4xf32>
    tpu.vector_store %arg5[%c0_5, %c0_6], %6 {strides = array<i32>} : memref<16x4xf32, #tpu.memory_space<vmem>>, vector<16x4xf32>,
    return
  }
  func.func @transform_0(%arg0: i32, %arg1: i32) -> (i32, i32) {
    %c0_i32 = arith.constant 0 : i32
    %c0_i32_0 = arith.constant 0 : i32
    return %arg0, %c0_i32 : i32, i32
  }
  func.func @transform_1(%arg0: i32, %arg1: i32) -> (i32, i32) {
    %c0_i32 = arith.constant 0 : i32
    %c0_i32_0 = arith.constant 0 : i32
    return %c0_i32, %arg1 : i32, i32
  }
  func.func @transform_2(%arg0: i32, %arg1: i32) -> (i32, i32) {
    %c0_i32 = arith.constant 0 : i32
    %c0_i32_0 = arith.constant 0 : i32
    return %c0_i32, %arg1 : i32, i32
  }
  func.func @transform_3(%arg0: i32, %arg1: i32) -> (i32, i32) {
    %c0_i32 = arith.constant 0 : i32
    return %arg0, %arg1 : i32, i32
  }
}

module attributes {stable_mosaic.version = 11 : i64} {
  func.func @_moe_expert_kernel(%arg0: i32, %arg1: i32, %arg2: i32, %arg3: memref<16x32xf32, #tpu.memory_space<vmem>>, %arg4: memref<1x32x128xbf16, #tpu.memory_space<vmem>>, %arg5: memref<1x1x128xf32, #tpu.memory_space<vmem>>, %arg6: memref<1x128x32xbf16, #tpu.memory_space<vmem>>, %arg7: memref<1x1x32xf32, #tpu.memory_space<vmem>>, %arg8: memref<16x4xf32, #tpu.memory_space<vmem>>, %arg9: memref<16x32xf32, #tpu.memory_space<vmem>>, %arg10: memref<16x32xf32, #tpu.memory_space<vmem>>) attributes {dimension_semantics = [#tpu.dimension_semantics<parallel>, #tpu.dimension_semantics<arbitrary>, #tpu.dimension_semantics<arbitrary>], iteration_bounds = array<i64: 1, 4, 1>, scalar_prefetch = 0 : i64, scratch_operands = 1 : i64, tpu.core_type = #tpu.core_type<tc>, window_params = [{transform_indices = @transform_0, window_bounds = array<i64: 16, 32>}, {transform_indices = @transform_1, window_bounds = array<i64: 1, 32, 128>}, {transform_indices = @transform_2, window_bounds = array<i64: 1, 1, 128>}, {transform_indices = @transform_3, window_bounds = array<i64: 1, 128, 32>}, {transform_indices = @transform_4, window_bounds = array<i64: 1, 1, 32>}, {transform_indices = @transform_5, window_bounds = array<i64: 16, 4>}, {transform_indices = @transform_6, window_bounds = array<i64: 16, 32>}]} {
    %c0_i32 = arith.constant 0 : i32
    %0 = arith.cmpi eq, %arg1, %c0_i32 : i32
    %c0_i32_0 = arith.constant 0 : i32
    %1 = arith.cmpi eq, %arg2, %c0_i32_0 : i32
    %2 = arith.andi %0, %1 : i1
    %3 = arith.extui %2 : i1 to i32
    %c0_i32_1 = arith.constant 0 : i32
    %4 = arith.cmpi ne, %3, %c0_i32_1 : i32
    scf.if %4 {
      %cst_31 = arith.constant 0.000000e+00 : f32
      %58 = vector.broadcast %cst_31 : f32 to vector<16x32xf32>
      %c0_32 = arith.constant 0 : index
      %c0_33 = arith.constant 0 : index
      %59 = vector.load %arg10[%c0_32, %c0_33] : memref<16x32xf32, #tpu.memory_space<vmem>>, vector<16x32xf32>
      tpu.vector_store %arg10[%c0_32, %c0_33], %58 {strides = array<i32>} : memref<16x32xf32, #tpu.memory_space<vmem>>, vector<16x32xf32>,
    } else {
    }
    %c0 = arith.constant 0 : index
    %c0_2 = arith.constant 0 : index
    %5 = vector.load %arg3[%c0, %c0_2] : memref<16x32xf32, #tpu.memory_space<vmem>>, vector<16x32xf32>
    %6 = arith.truncf %5 : vector<16x32xf32> to vector<16x32xbf16>
    %c0_3 = arith.constant 0 : index
    %c0_4 = arith.constant 0 : index
    %c0_5 = arith.constant 0 : index
    %7 = vector.load %arg4[%c0_3, %c0_4, %c0_5] : memref<1x32x128xbf16, #tpu.memory_space<vmem>>, vector<1x32x128xbf16>
    %8 = vector.shape_cast %7 : vector<1x32x128xbf16> to vector<32x128xbf16>
    %cst = arith.constant dense<0.000000e+00> : vector<16x128xf32>
    %9 = tpu.matmul %6, %8, %cst {dimension_numbers = #tpu.dot_dimension_numbers<[1], [0], [0], [1], [0, 0, 1, 1], [], []>} : vector<16x32xbf16>, vector<32x128xbf16>, vector<16x128xf32> -> vector<16x128xf32>
    %c0_6 = arith.constant 0 : index
    %c0_7 = arith.constant 0 : index
    %c0_8 = arith.constant 0 : index
    %10 = vector.load %arg5[%c0_6, %c0_7, %c0_8] : memref<1x1x128xf32, #tpu.memory_space<vmem>>, vector<1x1x128xf32>
    %11 = vector.shape_cast %10 : vector<1x1x128xf32> to vector<1x128xf32>
    %12 = vector.broadcast %11 : vector<1x128xf32> to vector<16x128xf32>
    %13 = arith.addf %9, %12 : vector<16x128xf32>
    %cst_9 = arith.constant 5.000000e-01 : f32
    %14 = vector.broadcast %cst_9 : f32 to vector<16x128xf32>
    %15 = arith.mulf %14, %13 : vector<16x128xf32>
    %cst_10 = arith.constant 4.471500e-02 : f32
    %16 = vector.broadcast %cst_10 : f32 to vector<16x128xf32>
    %17 = arith.mulf %16, %13 : vector<16x128xf32>
    %18 = arith.mulf %17, %13 : vector<16x128xf32>
    %19 = arith.mulf %18, %13 : vector<16x128xf32>
    %20 = arith.addf %13, %19 : vector<16x128xf32>
    %cst_11 = arith.constant 0.797884583 : f32
    %21 = vector.broadcast %cst_11 : f32 to vector<16x128xf32>
    %22 = arith.mulf %21, %20 : vector<16x128xf32>
    %23 = math.tanh %22 : vector<16x128xf32>
    %cst_12 = arith.constant 1.000000e+00 : f32
    %24 = vector.broadcast %cst_12 : f32 to vector<16x128xf32>
    %25 = arith.addf %24, %23 : vector<16x128xf32>
    %26 = arith.mulf %15, %25 : vector<16x128xf32>
    %27 = arith.truncf %26 : vector<16x128xf32> to vector<16x128xbf16>
    %c0_13 = arith.constant 0 : index
    %c0_14 = arith.constant 0 : index
    %c0_15 = arith.constant 0 : index
    %28 = vector.load %arg6[%c0_13, %c0_14, %c0_15] : memref<1x128x32xbf16, #tpu.memory_space<vmem>>, vector<1x128x32xbf16>
    %29 = vector.shape_cast %28 : vector<1x128x32xbf16> to vector<128x32xbf16>
    %cst_16 = arith.constant dense<0.000000e+00> : vector<16x32xf32>
    %30 = tpu.matmul %27, %29, %cst_16 {dimension_numbers = #tpu.dot_dimension_numbers<[1], [0], [0], [1], [0, 0, 1, 1], [], []>} : vector<16x128xbf16>, vector<128x32xbf16>, vector<16x32xf32> -> vector<16x32xf32>
    %c0_i32_17 = arith.constant 0 : i32
    %31 = arith.cmpi eq, %arg2, %c0_i32_17 : i32
    %32 = arith.extui %31 : i1 to i32
    %33 = arith.sitofp %32 : i32 to f32
    %c0_18 = arith.constant 0 : index
    %c0_19 = arith.constant 0 : index
    %c0_20 = arith.constant 0 : index
    %34 = vector.load %arg7[%c0_18, %c0_19, %c0_20] : memref<1x1x32xf32, #tpu.memory_space<vmem>>, vector<1x1x32xf32>
    %35 = vector.shape_cast %34 : vector<1x1x32xf32> to vector<1x32xf32>
    %36 = vector.broadcast %33 : f32 to vector<1x32xf32>
    %37 = arith.mulf %36, %35 : vector<1x32xf32>
    %38 = vector.broadcast %37 : vector<1x32xf32> to vector<16x32xf32>
    %39 = arith.addf %30, %38 : vector<16x32xf32>
    %c0_21 = arith.constant 0 : index
    %c0_22 = arith.constant 0 : index
    %40 = vector.load %arg8[%c0_21, %c0_22] : memref<16x4xf32, #tpu.memory_space<vmem>>, vector<16x4xf32>
    %41 = tpu.iota {dimensions = array<i32: 1>} : vector<16x4xi32>
    %42 = vector.broadcast %arg1 : i32 to vector<16x4xi32>
    %43 = arith.cmpi eq, %41, %42 : vector<16x4xi32>
    %cst_23 = arith.constant 0.000000e+00 : f32
    %44 = vector.broadcast %cst_23 : f32 to vector<16x4xf32>
    %45 = arith.select %43, %40, %44 : vector<16x4xi1>, vector<16x4xf32>
    %cst_24 = arith.constant dense<0.000000e+00> : vector<16xf32>
    %46 = vector.multi_reduction <add>, %45, %cst_24 [1] : vector<16x4xf32> to vector<16xf32>
    %47 = vector.shape_cast %46 : vector<16xf32> to vector<16x1xf32>
    %c0_25 = arith.constant 0 : index
    %c0_26 = arith.constant 0 : index
    %48 = vector.load %arg10[%c0_25, %c0_26] : memref<16x32xf32, #tpu.memory_space<vmem>>, vector<16x32xf32>
    %49 = vector.broadcast %47 : vector<16x1xf32> to vector<16x32xf32>
    %50 = arith.mulf %49, %39 : vector<16x32xf32>
    %51 = arith.addf %48, %50 : vector<16x32xf32>
    %c0_27 = arith.constant 0 : index
    %c0_28 = arith.constant 0 : index
    %52 = vector.load %arg10[%c0_27, %c0_28] : memref<16x32xf32, #tpu.memory_space<vmem>>, vector<16x32xf32>
    tpu.vector_store %arg10[%c0_27, %c0_28], %51 {strides = array<i32>} : memref<16x32xf32, #tpu.memory_space<vmem>>, vector<16x32xf32>,
    %c3_i32 = arith.constant 3 : i32
    %53 = arith.cmpi eq, %arg1, %c3_i32 : i32
    %c0_i32_29 = arith.constant 0 : i32
    %54 = arith.cmpi eq, %arg2, %c0_i32_29 : i32
    %55 = arith.andi %53, %54 : i1
    %56 = arith.extui %55 : i1 to i32
    %c0_i32_30 = arith.constant 0 : i32
    %57 = arith.cmpi ne, %56, %c0_i32_30 : i32
    scf.if %57 {
      %c0_31 = arith.constant 0 : index
      %c0_32 = arith.constant 0 : index
      %58 = vector.load %arg10[%c0_31, %c0_32] : memref<16x32xf32, #tpu.memory_space<vmem>>, vector<16x32xf32>
      %c0_33 = arith.constant 0 : index
      %c0_34 = arith.constant 0 : index
      %59 = vector.load %arg9[%c0_33, %c0_34] : memref<16x32xf32, #tpu.memory_space<vmem>>, vector<16x32xf32>
      tpu.vector_store %arg9[%c0_33, %c0_34], %58 {strides = array<i32>} : memref<16x32xf32, #tpu.memory_space<vmem>>, vector<16x32xf32>,
    } else {
    }
    return
  }
  func.func @transform_0(%arg0: i32, %arg1: i32, %arg2: i32) -> (i32, i32) {
    %c0_i32 = arith.constant 0 : i32
    %c0_i32_0 = arith.constant 0 : i32
    return %arg0, %c0_i32 : i32, i32
  }
  func.func @transform_1(%arg0: i32, %arg1: i32, %arg2: i32) -> (i32, i32, i32) {
    %c0_i32 = arith.constant 0 : i32
    %c0_i32_0 = arith.constant 0 : i32
    return %arg1, %c0_i32, %arg2 : i32, i32, i32
  }
  func.func @transform_2(%arg0: i32, %arg1: i32, %arg2: i32) -> (i32, i32, i32) {
    %c0_i32 = arith.constant 0 : i32
    %c0_i32_0 = arith.constant 0 : i32
    return %arg1, %c0_i32, %arg2 : i32, i32, i32
  }
  func.func @transform_3(%arg0: i32, %arg1: i32, %arg2: i32) -> (i32, i32, i32) {
    %c0_i32 = arith.constant 0 : i32
    %c0_i32_0 = arith.constant 0 : i32
    return %arg1, %arg2, %c0_i32 : i32, i32, i32
  }
  func.func @transform_4(%arg0: i32, %arg1: i32, %arg2: i32) -> (i32, i32, i32) {
    %c0_i32 = arith.constant 0 : i32
    %c0_i32_0 = arith.constant 0 : i32
    %c0_i32_1 = arith.constant 0 : i32
    return %arg1, %c0_i32, %c0_i32_0 : i32, i32, i32
  }
  func.func @transform_5(%arg0: i32, %arg1: i32, %arg2: i32) -> (i32, i32) {
    %c0_i32 = arith.constant 0 : i32
    %c0_i32_0 = arith.constant 0 : i32
    return %arg0, %c0_i32 : i32, i32
  }
  func.func @transform_6(%arg0: i32, %arg1: i32, %arg2: i32) -> (i32, i32) {
    %c0_i32 = arith.constant 0 : i32
    %c0_i32_0 = arith.constant 0 : i32
    return %arg0, %c0_i32 : i32, i32
  }
}

module attributes {stable_mosaic.version = 11 : i64} {
  func.func @_matmul_bias_kernel(%arg0: i32, %arg1: i32, %arg2: memref<16x32xf32, #tpu.memory_space<vmem>>, %arg3: memref<32x64xbf16, #tpu.memory_space<vmem>>, %arg4: memref<1x64xf32, #tpu.memory_space<vmem>>, %arg5: memref<16x64xf32, #tpu.memory_space<vmem>>) attributes {dimension_semantics = [#tpu.dimension_semantics<parallel>, #tpu.dimension_semantics<parallel>], iteration_bounds = array<i64: 1, 1>, scalar_prefetch = 0 : i64, scratch_operands = 0 : i64, tpu.core_type = #tpu.core_type<tc>, window_params = [{transform_indices = @transform_0, window_bounds = array<i64: 16, 32>}, {transform_indices = @transform_1, window_bounds = array<i64: 32, 64>}, {transform_indices = @transform_2, window_bounds = array<i64: 1, 64>}, {transform_indices = @transform_3, window_bounds = array<i64: 16, 64>}]} {
    %c0 = arith.constant 0 : index
    %c0_0 = arith.constant 0 : index
    %0 = vector.load %arg2[%c0, %c0_0] : memref<16x32xf32, #tpu.memory_space<vmem>>, vector<16x32xf32>
    %1 = arith.truncf %0 : vector<16x32xf32> to vector<16x32xbf16>
    %c0_1 = arith.constant 0 : index
    %c0_2 = arith.constant 0 : index
    %2 = vector.load %arg3[%c0_1, %c0_2] : memref<32x64xbf16, #tpu.memory_space<vmem>>, vector<32x64xbf16>
    %cst = arith.constant dense<0.000000e+00> : vector<16x64xf32>
    %3 = tpu.matmul %1, %2, %cst {dimension_numbers = #tpu.dot_dimension_numbers<[1], [0], [0], [1], [0, 0, 1, 1], [], []>} : vector<16x32xbf16>, vector<32x64xbf16>, vector<16x64xf32> -> vector<16x64xf32>
    %c0_3 = arith.constant 0 : index
    %c0_4 = arith.constant 0 : index
    %4 = vector.load %arg4[%c0_3, %c0_4] : memref<1x64xf32, #tpu.memory_space<vmem>>, vector<1x64xf32>
    %5 = vector.broadcast %4 : vector<1x64xf32> to vector<16x64xf32>
    %6 = arith.addf %3, %5 : vector<16x64xf32>
    %c0_5 = arith.constant 0 : index
    %c0_6 = arith.constant 0 : index
    %7 = vector.load %arg5[%c0_5, %c0_6] : memref<16x64xf32, #tpu.memory_space<vmem>>, vector<16x64xf32>
    tpu.vector_store %arg5[%c0_5, %c0_6], %6 {strides = array<i32>} : memref<16x64xf32, #tpu.memory_space<vmem>>, vector<16x64xf32>,
    return
  }
  func.func @transform_0(%arg0: i32, %arg1: i32) -> (i32, i32) {
    %c0_i32 = arith.constant 0 : i32
    %c0_i32_0 = arith.constant 0 : i32
    return %arg0, %c0_i32 : i32, i32
  }
  func.func @transform_1(%arg0: i32, %arg1: i32) -> (i32, i32) {
    %c0_i32 = arith.constant 0 : i32
    %c0_i32_0 = arith.constant 0 : i32
    return %c0_i32, %arg1 : i32, i32
  }
  func.func @transform_2(%arg0: i32, %arg1: i32) -> (i32, i32) {
    %c0_i32 = arith.constant 0 : i32
    %c0_i32_0 = arith.constant 0 : i32
    return %c0_i32, %arg1 : i32, i32
  }
  func.func @transform_3(%arg0: i32, %arg1: i32) -> (i32, i32) {
    %c0_i32 = arith.constant 0 : i32
    return %arg0, %arg1 : i32, i32
  }
}

</mosaic_0001>

<bundles_post_ra>
// kernel: moe_gpt_forward.17
= control target key start
LH: loop header
LB: loop body
LE: loop exit
PB: predicated region body
PF: predicated region fallthrough
CT: control target
= control target key end

     0   :  { %v112_v0 = vmov 0.0   ;;  %vm113_vm0 = vmmov 0   ;;  %vm41_vm1 = vcmask 261120   ;;  %vm86_vm2 = vcmask 785408   ;;  %s155_s1 = inlined_call_operand.vmem [shape: bf16[32,96], index: 1, kind: input, shape index: {}]   ;;  %s156_s0 = inlined_call_operand.vmem [shape: f32[16,32], index: 0, kind: input, shape index: {}]   ;;  %s157_s2 = inlined_call_operand.vmem [shape: f32[1,96], index: 2, kind: input, shape index: {}]   ;;  %s158_s3 = inlined_call_operand.vmem [shape: f32[16,96], index: 3, kind: output, shape index: {}]  }
   0x1   :  { %100 = vmatprep.subr.bf16.mxu0 %v112_v0  ;;  %v110_v1 = vld [vmem:[%s155_s1 + $0x8] sm:$0xff]   ;;  %104 = vmatprep.mubr.msk.bf16.mxu0 %vm113_vm0, %v112_v0  ;;  %v111_v2 = vld [vmem:[%s155_s1] sm:$0xff]  }
   0x2   :  { %101 = vmatpush3.bf16.msra.mxu0 %v110_v1  ;;  %v15_v3 = vld [vmem:[%s156_s0] sm:$0xff]  ;;  %v16_v4 = vld [vmem:[%s156_s0 + $0x8] sm:$0xff] }
   0x3   :  { %102 = vmatprep.subr.bf16.mxu0 %v112_v0  ;;  %v17_v5 = vpack.c.bf16 %v16_v4, %v15_v3  ;;  %v93_v6 = vld [vmem:[%s157_s2] ss:$0 sm:$0xff] }
   0x6   :  { %103 = vmatpush3.bf16.msra.mxu0 %v111_v2 }
   0x9   :  { %105 = vmatmul.mubr.msk.bf16.vlgmr.msra.gmra.mxu0 %vm41_vm1, %v17_v5 }
  0xc9   :  { %v79_v7 = vpop.f32.mrf.mxu0 }
  0xca   :  { %v80_v8 = vadd.f32 %v93_v6, %v79_v7 }
  0xcb   :  { %v106_v9 = vpop.f32.mrf.mxu0 }
  0xcc   :  { %87 = vst.msk [vmem:[%s158_s3] sm:$0xff] %vm86_vm2, %v80_v8 }
  0xcd   :  { %v82_v10 = vpop.f32.mrf.mxu0 }
  0xce   :  { %v83_v11 = vadd.f32 %v93_v6, %v82_v10 }
  0xcf   :  { %v107_v12 = vpop.f32.mrf.mxu0 }
  0xd0   :  { %88 = vst.msk [vmem:[%s158_s3 + $0x8] sm:$0xff] %vm86_vm2, %v83_v11 }

// kernel: moe_gpt_forward.16
= control target key start
LH: loop header
LB: loop body
LE: loop exit
PB: predicated region body
PF: predicated region fallthrough
CT: control target
= control target key end

     0   :  { %vm16_vm0 = vcmask 261120   ;;  %s118_s0 = inlined_call_operand.vmem [shape: f32[16,32], index: 0, kind: input, shape index: {}]   ;;  %s119_s1 = inlined_call_operand.vmem [shape: f32[1,32], index: 1, kind: input, shape index: {}]   ;;  %s120_s2 = inlined_call_operand.vmem [shape: f32[1,32], index: 2, kind: input, shape index: {}]   ;;  %s121_s3 = inlined_call_operand.vmem [shape: f32[16,32], index: 3, kind: output, shape index: {}]  }
   0x1   :  { %v14_v0 = vld [vmem:[%s118_s0] sm:$0xff]  ;;  %v15_v1 = vld [vmem:[%s118_s0 + $0x8] sm:$0xff] }
   0x2   :  { %v17_v2 = vsel %vm16_vm0, %v14_v0, 0.0  ;;  %v20_v3 = vsel %vm16_vm0, %v15_v1, 0.0  ;;  %v68_v21 = vld [vmem:[%s119_s1] ss:$0 sm:$0xff] }
   0x3   :  { %18 = vadd.xlane.f32.xlu0 %v17_v2  ;;  %v69_v23 = vld [vmem:[%s120_s2] ss:$0 sm:$0xff] }
   0x7   :  { %21 = vadd.xlane.f32.xlu0 %v20_v3 }
  0x8c   :  { %v19_v4 = vpop.xlane.xlu0 %18 }
  0x8d   :  { %v24_v5 = vmul.f32 0.03125, %v19_v4 }
  0x8f   :  { %v26_v6 = vsub.f32 %v14_v0, %v24_v5 }
  0x90   :  { %v22_v7 = vpop.xlane.xlu0 %21 }
  0x91   :  { %v25_v8 = vmul.f32 0.03125, %v22_v7  ;;  %v28_v9 = vmul.f32 %v26_v6, %v26_v6 }
  0x93   :  { %v27_v10 = vsub.f32 %v15_v1, %v25_v8  ;;  %v30_v11 = vsel %vm16_vm0, %v28_v9, 0.0 }
  0x94   :  { %31 = vadd.xlane.f32.xlu1 %v30_v11 }
  0x95   :  { %v29_v12 = vmul.f32 %v27_v10, %v27_v10 }
  0x97   :  { %v33_v13 = vsel %vm16_vm0, %v29_v12, 0.0 }
  0x98   :  { %34 = vadd.xlane.f32.xlu1 %v33_v13 }
 0x11d   :  { %v32_v14 = vpop.xlane.xlu1 %31 }
 0x11e   :  { %v36_v15 = vmul.f32 0.03125, %v32_v14 }
 0x120   :  { %v38_v16 = vadd.f32 1e-05, %v36_v15 }
 0x121   :  { %v35_v17 = vpop.xlane.xlu1 %34 }
 0x122   :  { %70 = vrsqrt.f32 %v38_v16  ;;  %v37_v18 = vmul.f32 0.03125, %v35_v17 }
 0x124   :  { %v39_v19 = vadd.f32 1e-05, %v37_v18 }
 0x126   :  { %72 = vrsqrt.f32 %v39_v19 }
 0x12f   :  { %v71_v20 = vpop.eup %70 }
 0x130   :  { %v42_v22 = vmul.f32 %v71_v20, %v26_v6 }
 0x132   :  { %v51_v24 = vmul.f32 %v68_v21, %v42_v22 }
 0x133   :  { %v73_v25 = vpop.eup %72 }
 0x134   :  { %v60_v26 = vadd.f32 %v69_v23, %v51_v24  ;;  %v43_v27 = vmul.f32 %v73_v25, %v27_v10 }
 0x136   :  { %62 = vst.msk [vmem:[%s121_s3] sm:$0xff] %vm16_vm0, %v60_v26  ;;  %v52_v28 = vmul.f32 %v68_v21, %v43_v27 }
 0x138   :  { %v61_v29 = vadd.f32 %v69_v23, %v52_v28 }
 0x13a   :  { %63 = vst.msk [vmem:[%s121_s3 + $0x8] sm:$0xff] %vm16_vm0, %v61_v29 }

// kernel: moe_gpt_forward.19
= control target key start
LH: loop header
LB: loop body
LE: loop exit
PB: predicated region body
PF: predicated region fallthrough
CT: control target
= control target key end

     0   :  { %v111_v0 = vmov 0.0   ;;  %vm112_vm0 = vmmov 0   ;;  %vm41_vm1 = vcmask 261120   ;;  %s154_s1 = inlined_call_operand.vmem [shape: bf16[32,32], index: 1, kind: input, shape index: {}]   ;;  %s155_s0 = inlined_call_operand.vmem [shape: f32[16,32], index: 0, kind: input, shape index: {}]   ;;  %s156_s2 = inlined_call_operand.vmem [shape: f32[1,32], index: 2, kind: input, shape index: {}]   ;;  %s157_s3 = inlined_call_operand.vmem [shape: f32[16,32], index: 3, kind: output, shape index: {}]  }
   0x1   :  { %99 = vmatprep.subr.bf16.mxu0 %v111_v0  ;;  %v109_v1 = vld [vmem:[%s154_s1 + $0x8] sm:$0xff]   ;;  %103 = vmatprep.mubr.msk.bf16.mxu0 %vm112_vm0, %v111_v0  ;;  %v110_v2 = vld [vmem:[%s154_s1] sm:$0xff]  }
   0x2   :  { %100 = vmatpush3.bf16.msra.mxu0 %v109_v1  ;;  %v15_v3 = vld [vmem:[%s155_s0] sm:$0xff]  ;;  %v16_v4 = vld [vmem:[%s155_s0 + $0x8] sm:$0xff] }
   0x3   :  { %101 = vmatprep.subr.bf16.mxu0 %v111_v0  ;;  %v17_v5 = vpack.c.bf16 %v16_v4, %v15_v3  ;;  %v92_v6 = vld [vmem:[%s156_s2] ss:$0 sm:$0xff] }
   0x6   :  { %102 = vmatpush3.bf16.msra.mxu0 %v110_v2 }
   0x9   :  { %104 = vmatmul.mubr.msk.bf16.vlgmr.msra.gmra.mxu0 %vm41_vm1, %v17_v5 }
  0xc9   :  { %v79_v7 = vpop.f32.mrf.mxu0 }
  0xca   :  { %v80_v8 = vadd.f32 %v92_v6, %v79_v7 }
  0xcb   :  { %v105_v9 = vpop.f32.mrf.mxu0 }
  0xcc   :  { %86 = vst.msk [vmem:[%s157_s3] sm:$0xff] %vm41_vm1, %v80_v8 }
  0xcd   :  { %v82_v10 = vpop.f32.mrf.mxu0 }
  0xce   :  { %v83_v11 = vadd.f32 %v92_v6, %v82_v10 }
  0xcf   :  { %v106_v12 = vpop.f32.mrf.mxu0 }
  0xd0   :  { %87 = vst.msk [vmem:[%s157_s3 + $0x8] sm:$0xff] %vm41_vm1, %v83_v11 }

// kernel: moe_gpt_forward.18
= control target key start
LH: loop header
LB: loop body
LE: loop exit
PB: predicated region body
PF: predicated region fallthrough
CT: control target
= control target key end

     0   :  { %s888_s12 = smov 0   ;;  %s965_s0 = inlined_call_operand.vmem [shape: f32[2,4,8,8], index: 0, kind: input, shape index: {}]   ;;  %s966_s1 = inlined_call_operand.vmem [shape: f32[2,4,8,8], index: 1, kind: input, shape index: {}]   ;;  %s967_s2 = inlined_call_operand.vmem [shape: f32[2,4,8,8], index: 2, kind: input, shape index: {}]   ;;  %s968_s3 = inlined_call_operand.vmem [shape: f32[2,4,8,8], index: 3, kind: output, shape index: {}]  }
   0x1 LB: > { %s741_s13 = sadd.s32 4294967295, %s864_s12   ;;  %p745_p0 = scmp.ge.s32.totalorder %s864_s12, 1  ;;  %s864_s12 = sphi %s888_s12, %s13_s12  }
   0x2   : > { %p157_p1 = scmp.lt.s32.totalorder %s864_s12, 3 }
   0x4   : > { %p158_p2 = pnand %p745_p0, %p157_p1 }
   0x5   : > { %p191_p3 = scmp.lt.s32.totalorder (!%p158_p2), %s741_s13, 1 }
   0x6   : > { %161 = sbr.rel (%p158_p2) target bundleno = 743 (0x2e7), region = 32 }
   0xb   : > { %v866_v0 = vmov 0.0   ;;  %s970_s13 = smov (!%p191_p3, %s741_s13), 1  ;;  %vm867_vm0 = vmmov 0   ;;  %vm240_vm1 = vcmask 64512   ;;  %vm476_vm2 = vcmask 1043456  }
   0xc   : > { %784 = vmatprep.subr.bf16.mxu0 %v866_v0  ;;  %790 = vmatprep.subr.bf16.mxu1 %v866_v0  ;;  %s902_s14 = sshll.u32 %s970_s13, 5 }
   0xd   : > { %786 = vmatprep.mubr.msk.bf16.mxu0 %vm867_vm0, %v866_v0  ;;  %792 = vmatprep.mubr.msk.bf16.mxu1 %vm867_vm0, %v866_v0  ;;  %s200_s17 = scalar_lea.vmem %s966_s1, %s902_s14  ;;  %s195_s20 = scalar_lea.vmem %s965_s0, %s902_s14 }
   0xe   : > { %v224_v1 = vld [vmem:[%s200_s17] sm:$0xff]  ;;  %v225_v2 = vld [vmem:[%s200_s17 + $0x8] sm:$0xff]  ;;  %v226_v7 = vld [vmem:[%s200_s17 + $0x10] sm:$0xff]  ;;  %s205_s23 = scalar_lea.vmem %s967_s2, %s902_s14  ;;  %s210_s26 = scalar_lea.vmem %s968_s3, %s902_s14 }
   0xf   : > { %v212_v3 = vld [vmem:[%s195_s20] sm:$0xff]  ;;  %v228_v4 = vpack.c.bf16 %v224_v1, %v224_v1  ;;  %v229_v5 = vpack.c.bf16 %v225_v2, %v225_v2  ;;  %v213_v6 = vld [vmem:[%s195_s20 + $0x8] sm:$0xff]  ;;  %v227_v8 = vld [vmem:[%s200_s17 + $0x18] sm:$0xff]  ;;  %v230_v13 = vpack.c.bf16 %v226_v7, %v226_v7 }
  0x10   : > { %v216_v11 = vmul.f32 0.35355338, %v212_v3  ;;  %v217_v12 = vmul.f32 0.35355338, %v213_v6  ;;  %v231_v14 = vpack.c.bf16 %v227_v8, %v227_v8  ;;  %v214_v17 = vld [vmem:[%s195_s20 + $0x10] sm:$0xff]  ;;  %v215_v18 = vld [vmem:[%s195_s20 + $0x18] sm:$0xff] }
  0x11   : > { %v245_v9 = vsel %vm240_vm1, %v228_v4, 0  ;;  %v291_v10 = vsel %vm240_vm1, %v229_v5, 0  ;;  %v337_v19 = vsel %vm240_vm1, %v230_v13, 0  ;;  %v218_v21 = vmul.f32 0.35355338, %v214_v17  ;;  %v232_v2 = vld [vmem:[%s205_s23] sm:$0xff] }
  0x12   : > { %785 = vmatpush3.bf16.xpose.msra.mxu0 %v245_v9  ;;  %791 = vmatpush3.bf16.xpose.msra.mxu1 %v291_v10  ;;  %v220_v15 = vpack.c.bf16 %v216_v11, %v216_v11  ;;  %v221_v16 = vpack.c.bf16 %v217_v12, %v217_v12  ;;  %v383_v20 = vsel %vm240_vm1, %v231_v14, 0  ;;  %v219_v22 = vmul.f32 0.35355338, %v215_v18  ;;  %v233_v4 = vld [vmem:[%s205_s23 + $0x8] sm:$0xff]  ;;  %v234_v8 = vld [vmem:[%s205_s23 + $0x10] sm:$0xff]  ;;  %v235_v11 = vld [vmem:[%s205_s23 + $0x18] sm:$0xff] }
  0x13   : > { %796 = vmatprep.subr.bf16.mxu0 %v866_v0  ;;  %802 = vmatprep.subr.bf16.mxu1 %v866_v0  ;;  %v222_v23 = vpack.c.bf16 %v218_v21, %v218_v21  ;;  %v236_v3 = vpack.c.bf16 %v232_v2, %v232_v2  ;;  %v237_v5 = vpack.c.bf16 %v233_v4, %v233_v4 }
  0x14   : > { %v223_v24 = vpack.c.bf16 %v219_v22, %v219_v22  ;;  %v238_v9 = vpack.c.bf16 %v234_v8, %v234_v8  ;;  %v239_v12 = vpack.c.bf16 %v235_v11, %v235_v11 }
  0x15   : > { %v478_v6 = vsel %vm476_vm2, %v236_v3, 0  ;;  %v524_v7 = vsel %vm476_vm2, %v237_v5, 0 }
  0x16   : > { %v570_v10 = vsel %vm476_vm2, %v238_v9, 0  ;;  %v616_v13 = vsel %vm476_vm2, %v239_v12, 0 }
  0x19   : > { %787 = vmatmul.mubr.msk.bf16.vlgmr.msra.gmra.mxu0 %vm240_vm1, %v220_v15  ;;  %793 = vmatmul.mubr.msk.bf16.vlgmr.msra.gmra.mxu1 %vm240_vm1, %v221_v16 }
  0x1a   : > { %797 = vmatpush3.bf16.xpose.msra.mxu0 %v337_v19  ;;  %803 = vmatpush3.bf16.xpose.msra.mxu1 %v383_v20 }
  0x1b   : > { %798 = vmatprep.mubr.msk.bf16.mxu0 %vm867_vm0, %v866_v0  ;;  %804 = vmatprep.mubr.msk.bf16.mxu1 %vm867_vm0, %v866_v0 }
  0x1c   : > { %808 = vmatprep.subr.bf16.mxu0 %v866_v0  ;;  %814 = vmatprep.subr.bf16.mxu1 %v866_v0 }
  0x21   : > { %799 = vmatmul.mubr.msk.bf16.vlgmr.msra.gmra.mxu0 %vm240_vm1, %v222_v23  ;;  %805 = vmatmul.mubr.msk.bf16.vlgmr.msra.gmra.mxu1 %vm240_vm1, %v223_v24 }
  0x22   : > { %810 = vmatprep.mubr.msk.bf16.mxu0 %vm867_vm0, %v866_v0  ;;  %816 = vmatprep.mubr.msk.bf16.mxu1 %vm867_vm0, %v866_v0 }
  0x23   : > { %809 = vmatpush3.bf16.msra.mxu0 %v478_v6  ;;  %815 = vmatpush3.bf16.msra.mxu1 %v524_v7 }
  0x24   : > { %820 = vmatprep.subr.bf16.mxu0 %v866_v0  ;;  %826 = vmatprep.subr.bf16.mxu1 %v866_v0 }
  0xd9   : > { %v281_v25 = vpop.f32.mrf.mxu0  ;;  %v327_v26 = vpop.f32.mrf.mxu1 }
  0xda   : > { %v425_v27 = vsel %vm240_vm1, %v281_v25, -inf  ;;  %v428_v30 = vsel %vm240_vm1, %v327_v26, -inf }
  0xdb   : > { %v794_v28 = vpop.f32.mrf.mxu1  ;;  %426 = vmax.xlane.f32.xlu0 %v425_v27  ;;  %v788_v29 = vpop.f32.mrf.mxu0 }
  0xdd   : > { %v284_v31 = vpop.f32.mrf.mxu0  ;;  %v330_v32 = vpop.f32.mrf.mxu1 }
  0xdf   : > { %v795_v33 = vpop.f32.mrf.mxu1  ;;  %429 = vmax.xlane.f32.xlu0 %v428_v30  ;;  %v789_v34 = vpop.f32.mrf.mxu0 }
  0xe1   : > { %v373_v35 = vpop.f32.mrf.mxu0  ;;  %v419_v36 = vpop.f32.mrf.mxu1 }
  0xe2   : > { %v431_v37 = vsel %vm240_vm1, %v373_v35, -inf  ;;  %v434_v40 = vsel %vm240_vm1, %v419_v36, -inf }
  0xe3   : > { %v806_v38 = vpop.f32.mrf.mxu1  ;;  %432 = vmax.xlane.f32.xlu1 %v431_v37  ;;  %v800_v39 = vpop.f32.mrf.mxu0 }
  0xe5   : > { %v376_v41 = vpop.f32.mrf.mxu0  ;;  %v422_v42 = vpop.f32.mrf.mxu1 }
  0xe7   : > { %v807_v43 = vpop.f32.mrf.mxu1  ;;  %435 = vmax.xlane.f32.xlu1 %v434_v40  ;;  %v801_v44 = vpop.f32.mrf.mxu0 }
 0x164   : > { %v427_v45 = vpop.xlane.xlu0 %426 }
 0x165   : > { %v437_v46 = vsub.f32 %v281_v25, %v427_v45 }
 0x167   : > { %v441_v47 = vmul.f32 1.442695, %v437_v46 }
 0x168   : > { %v430_v48 = vpop.xlane.xlu0 %429 }
 0x169   : > { %842 = vpow2.f32 %v441_v47  ;;  %v438_v49 = vsub.f32 %v327_v26, %v430_v48 }
 0x16b   : > { %v443_v50 = vmul.f32 1.442695, %v438_v49 }
 0x16c   : > { %v433_v51 = vpop.xlane.xlu1 %432 }
 0x16d   : > { %844 = vpow2.f32 %v443_v50  ;;  %v439_v52 = vsub.f32 %v373_v35, %v433_v51 }
 0x16f   : > { %v445_v53 = vmul.f32 1.442695, %v439_v52 }
 0x170   : > { %v436_v54 = vpop.xlane.xlu1 %435 }
 0x171   : > { %846 = vpow2.f32 %v445_v53  ;;  %v440_v55 = vsub.f32 %v419_v36, %v436_v54 }
 0x173   : > { %v447_v56 = vmul.f32 1.442695, %v440_v55 }
 0x175   : > { %848 = vpow2.f32 %v447_v56 }
 0x176   : > { %v843_v57 = vpop.eup %842 }
 0x177   : > { %v449_v58 = vsel %vm240_vm1, %v843_v57, 0.0 }
 0x178   : > { %450 = vadd.xlane.f32.xlu0 %v449_v58 }
 0x17a   : > { %v845_v59 = vpop.eup %844 }
 0x17b   : > { %v452_v60 = vsel %vm240_vm1, %v845_v59, 0.0 }
 0x17c   : > { %453 = vadd.xlane.f32.xlu1 %v452_v60 }
 0x17e   : > { %v847_v61 = vpop.eup %846 }
 0x17f   : > { %v455_v62 = vsel %vm240_vm1, %v847_v61, 0.0 }
 0x180   : > { %456 = vadd.xlane.f32.xlu0 %v455_v62 }
 0x182   : > { %v849_v63 = vpop.eup %848 }
 0x183   : > { %v458_v1 = vsel %vm240_vm1, %v849_v63, 0.0 }
 0x184   : > { %459 = vadd.xlane.f32.xlu1 %v458_v1 }
 0x201   : > { %v451_v14 = vpop.xlane.xlu0 %450 }
 0x202   : > { %850 = vrcp.f32 %v451_v14 }
 0x205   : > { %v454_v15 = vpop.xlane.xlu1 %453 }
 0x206   : > { %852 = vrcp.f32 %v454_v15 }
 0x209   : > { %v457_v16 = vpop.xlane.xlu0 %456 }
 0x20a   : > { %854 = vrcp.f32 %v457_v16 }
 0x20d   : > { %v460_v17 = vpop.xlane.xlu1 %459 }
 0x20e   : > { %856 = vrcp.f32 %v460_v17 }
 0x20f   : > { %v851_v18 = vpop.eup %850 }
 0x210   : > { %v465_v19 = vmul.f32 %v851_v18, %v843_v57 }
 0x212   : > { %v469_v20 = vpack.c.bf16 %v465_v19, %v465_v19 }
 0x213   : > { %v853_v21 = vpop.eup %852 }
 0x214   : > { %811 = vmatmul.mubr.msk.bf16.vlgmr.msra.gmra.mxu0 %vm240_vm1, %v469_v20  ;;  %v466_v22 = vmul.f32 %v853_v21, %v845_v59 }
 0x215   : > { %821 = vmatpush3.bf16.msra.mxu0 %v570_v10  ;;  %822 = vmatprep.mubr.msk.bf16.mxu0 %vm867_vm0, %v866_v0 }
 0x216   : > { %v470_v23 = vpack.c.bf16 %v466_v22, %v466_v22 }
 0x217   : > { %v855_v24 = vpop.eup %854 }
 0x218   : > { %817 = vmatmul.mubr.msk.bf16.vlgmr.msra.gmra.mxu1 %vm240_vm1, %v470_v23  ;;  %v467_v25 = vmul.f32 %v855_v24, %v847_v61 }
 0x219   : > { %827 = vmatpush3.bf16.msra.mxu1 %v616_v13  ;;  %828 = vmatprep.mubr.msk.bf16.mxu1 %vm867_vm0, %v866_v0 }
 0x21a   : > { %v471_v26 = vpack.c.bf16 %v467_v25, %v467_v25 }
 0x21b   : > { %v857_v27 = vpop.eup %856 }
 0x21c   : > { %823 = vmatmul.mubr.msk.bf16.vlgmr.msra.gmra.mxu0 %vm240_vm1, %v471_v26  ;;  %v468_v28 = vmul.f32 %v857_v27, %v849_v63 }
 0x21e   : > { %v472_v29 = vpack.c.bf16 %v468_v28, %v468_v28 }
 0x220   : > { %829 = vmatmul.mubr.msk.bf16.vlgmr.msra.gmra.mxu1 %vm240_vm1, %v472_v29 }
 0x2d4   : > { %v514_v30 = vpop.f32.mrf.mxu0 }
 0x2d5   : > { %658 = vst.msk [vmem:[%s210_s26] sm:$0xff] %vm240_vm1, %v514_v30 }
 0x2d6   : > { %v812_v31 = vpop.f32.mrf.mxu0 }
 0x2d8   : > { %v517_v32 = vpop.f32.mrf.mxu0  ;;  %v560_v33 = vpop.f32.mrf.mxu1 }
 0x2d9   : > { %659 = vst.msk [vmem:[%s210_s26 + $0x8] sm:$0xff] %vm240_vm1, %v560_v33 }
 0x2da   : > { %v813_v0 = vpop.f32.mrf.mxu0  ;;  %v818_v34 = vpop.f32.mrf.mxu1 }
 0x2dc   : > { %v563_v35 = vpop.f32.mrf.mxu1  ;;  %v606_v36 = vpop.f32.mrf.mxu0 }
 0x2dd   : > { %660 = vst.msk [vmem:[%s210_s26 + $0x10] sm:$0xff] %vm240_vm1, %v606_v36 }
 0x2de   : > { %v819_v37 = vpop.f32.mrf.mxu1  ;;  %v824_v38 = vpop.f32.mrf.mxu0 }
 0x2e0   : > { %v609_v39 = vpop.f32.mrf.mxu0  ;;  %v652_v40 = vpop.f32.mrf.mxu1 }
 0x2e1   : > { %661 = vst.msk [vmem:[%s210_s26 + $0x18] sm:$0xff] %vm240_vm1, %v652_v40 }
 0x2e2   : > { %v825_v41 = vpop.f32.mrf.mxu0  ;;  %v830_v42 = vpop.f32.mrf.mxu1 }
 0x2e4   : > { %v655_v43 = vpop.f32.mrf.mxu1 }
 0x2e6   : > { %v831_v44 = vpop.f32.mrf.mxu1 }
 0x2e7 PF: > { %s13_s12 = sadd.s32 1, %s864_s12  }
 0x2e8   : > { %p10_p4 = scmp.ge.s32.totalorder %s13_s12, 4  }
 0x2ea   :  { %12 = sbr.rel (!%p10_p4) target bundleno = 1 (0x1), region = 68 }

// kernel: moe_gpt_forward.21
= control target key start
LH: loop header
LB: loop body
LE: loop exit
PB: predicated region body
PF: predicated region fallthrough
CT: control target
= control target key end

     0   :  { %v112_v0 = vmov 0.0   ;;  %vm113_vm0 = vmmov 0   ;;  %vm41_vm1 = vcmask 261120   ;;  %vm86_vm2 = vcmask 31744   ;;  %s155_s1 = inlined_call_operand.vmem [shape: bf16[32,4], index: 1, kind: input, shape index: {}]   ;;  %s156_s0 = inlined_call_operand.vmem [shape: f32[16,32], index: 0, kind: input, shape index: {}]   ;;  %s157_s2 = inlined_call_operand.vmem [shape: f32[1,4], index: 2, kind: input, shape index: {}]   ;;  %s158_s3 = inlined_call_operand.vmem [shape: f32[16,4], index: 3, kind: output, shape index: {}]  }
   0x1   :  { %100 = vmatprep.subr.bf16.mxu0 %v112_v0  ;;  %v110_v1 = vld [vmem:[%s155_s1 + $0x8] sm:$0xff]   ;;  %104 = vmatprep.mubr.msk.bf16.mxu0 %vm113_vm0, %v112_v0  ;;  %v111_v2 = vld [vmem:[%s155_s1] sm:$0xff]  }
   0x2   :  { %101 = vmatpush3.bf16.msra.mxu0 %v110_v1  ;;  %v15_v3 = vld [vmem:[%s156_s0] sm:$0xff]  ;;  %v16_v4 = vld [vmem:[%s156_s0 + $0x8] sm:$0xff] }
   0x3   :  { %102 = vmatprep.subr.bf16.mxu0 %v112_v0  ;;  %v17_v5 = vpack.c.bf16 %v16_v4, %v15_v3  ;;  %v93_v6 = vld [vmem:[%s157_s2] ss:$0 sm:$0xff] }
   0x6   :  { %103 = vmatpush3.bf16.msra.mxu0 %v111_v2 }
   0x9   :  { %105 = vmatmul.mubr.msk.bf16.vlgmr.msra.gmra.mxu0 %vm41_vm1, %v17_v5 }
  0xc9   :  { %v79_v7 = vpop.f32.mrf.mxu0 }
  0xca   :  { %v80_v8 = vadd.f32 %v93_v6, %v79_v7 }
  0xcb   :  { %v106_v9 = vpop.f32.mrf.mxu0 }
  0xcc   :  { %87 = vst.msk [vmem:[%s158_s3] sm:$0xff] %vm86_vm2, %v80_v8 }
  0xcd   :  { %v82_v10 = vpop.f32.mrf.mxu0 }
  0xce   :  { %v83_v11 = vadd.f32 %v93_v6, %v82_v10 }
  0xcf   :  { %v107_v12 = vpop.f32.mrf.mxu0 }
  0xd0   :  { %88 = vst.msk [vmem:[%s158_s3 + $0x8] sm:$0xff] %vm86_vm2, %v83_v11 }

// kernel: moe_gpt_forward.31
= control target key start
LH: loop header
LB: loop body
LE: loop exit
PB: predicated region body
PF: predicated region fallthrough
CT: control target
= control target key end

     0   :  { %v150_v1 = vmov 0.0   ;;  %vm151_vm0 = vmmov 0   ;;  %s193_s0 = inlined_call_operand.vmem [shape: f32[16,32], index: 0, kind: input, shape index: {}]   ;;  %s194_s1 = inlined_call_operand.vmem [shape: bf16[32,64], index: 1, kind: input, shape index: {}]   ;;  %s195_s2 = inlined_call_operand.vmem [shape: f32[1,64], index: 2, kind: input, shape index: {}]   ;;  %s196_s3 = inlined_call_operand.hbm [shape: f32[16,64], index: 3, kind: output, shape index: {}]  }
   0x1   :  { %v126_v0 = vld [vmem:[%s194_s1 + $0x8] sm:$0xff]   ;;  %113 = vmatprep.subr.bf16.mxu0 %v150_v1  ;;  %v127_v2 = vld [vmem:[%s194_s1] sm:$0xff]   ;;  %117 = vmatprep.mubr.msk.bf16.mxu0 %vm151_vm0, %v150_v1 }
   0x2   :  { %114 = vmatpush3.bf16.msra.mxu0 %v126_v0  ;;  %v16_v3 = vld [vmem:[%s193_s0] sm:$0xff]  ;;  %v17_v4 = vld [vmem:[%s193_s0 + $0x8] sm:$0xff] }
   0x3   :  { %115 = vmatprep.subr.bf16.mxu0 %v150_v1 }
   0x4   :  { %8 = vsyncpa [#allocation3], 0  ;;  %v18_v5 = vpack.c.bf16 %v17_v4, %v16_v3  ;;  %vm42_vm1 = vcmask 261120   ;;  %v106_v6 = vld [vmem:[%s195_s2] ss:$0 sm:$0xff]  ;;  %vm87_vm2 = vcmask 523264  }
   0x5   :  { %s152_s1 = smov [#allocation2]  }
   0x6   :  { %116 = vmatpush3.bf16.msra.mxu0 %v127_v2  ;;  %s95_s22 = sshll.u32 %s152_s1, 4  ;;  %s96_s22 = int_to_ptr.vmem [resolvable:$true] %s95_s22 }
   0x7   :  { %s128_s0 = scalar_lea.vmem %s96_s22, 256  ;;  %p133_p1 = scmp.lt.s32.totalorder %s96_s22, %s96_s22 }
   0x8   :  { %p129_p0 = scmp.ne.s32.totalorder %s96_s22, %s128_s0  ;;  %p134_p2 = scmp.lt.s32.totalorder %s128_s0, %s128_s0 }
   0x9   :  { %118 = vmatmul.mubr.msk.bf16.vlgmr.msra.gmra.mxu0 %vm42_vm1, %v18_v5 }
   0xa   :  { %p135_p3 = por %p134_p2, %p133_p1 }
   0xc   :  { %p136_p4 = pnand %p135_p3, %p129_p0 }
  0xc9   :  { %v80_v7 = vpop.f32.mrf.mxu0 }
  0xca   :  { %v81_v8 = vadd.f32 %v106_v6, %v80_v7 }
  0xcb   :  { %v119_v9 = vpop.f32.mrf.mxu0 }
  0xcc   :  { %88 = vst.msk [vmem:[#allocation2] sm:$0xff] %vm87_vm2, %v81_v8 }
  0xcd   :  { %v83_v10 = vpop.f32.mrf.mxu0 }
  0xce   :  { %v84_v11 = vadd.f32 %v106_v6, %v83_v10 }
  0xcf   :  { %v120_v12 = vpop.f32.mrf.mxu0 }
  0xd0   :  { %89 = vst.msk [vmem:[#allocation2 + $0x8] sm:$0xff] %vm87_vm2, %v84_v11 }
  0xd1   :  { %139 = shalt.err (!%p136_p4)
}
  0xd2   :  { %s153_s2 = smov 128   ;;  %s154_s23 = smov 8  }
  0xd3   :  { %101 = dma.vmem_to_hbm [thread:$0]  %s96_s22, 256, %s196_s3, [#allocation3], %s153_s2, %s153_s2, %s154_s23  }
  0xd4   :  { %148 = dma.done.wait [#allocation3], 256  }
  0xd5   :  { %149 = vsyncadd [#allocation3], 4294967040 }
  0xd6   :  { %105 = vsyncpa [#allocation3], 1 }

// kernel: moe_gpt_forward.22
= control target key start
LH: loop header
LB: loop body
LE: loop exit
PB: predicated region body
PF: predicated region fallthrough
CT: control target
= control target key end

     0   :  { %s966_s21 = smov 0   ;;  %s968_s22 = smov 0   ;;  %s1063_s0 = inlined_call_operand.vmem [shape: f32[16,32], index: 0, kind: input, shape index: {}]   ;;  %s1064_s1 = inlined_call_operand.vmem [shape: bf16[4,32,128], index: 1, kind: input, shape index: {}]   ;;  %s1065_s2 = inlined_call_operand.vmem [shape: f32[4,1,128], index: 2, kind: input, shape index: {}]   ;;  %s1066_s3 = inlined_call_operand.vmem [shape: bf16[4,128,32], index: 3, kind: input, shape index: {}]   ;;  %s1067_s4 = inlined_call_operand.vmem [shape: f32[4,1,32], index: 4, kind: input, shape index: {}]   ;;  %s1068_s5 = inlined_call_operand.vmem [shape: f32[16,4], index: 5, kind: input, shape index: {}]   ;;  %s1069_s6 = inlined_call_operand.vmem [shape: f32[16,32], index: 6, kind: output, shape index: {}]  }
   0x1   :  { %s970_s23 = smov 0  }
   0x2 LB: > { %s31_s24 = sadd.s32 1, %s922_s22  ;;  %p795_p0 = scmp.ge.s32.totalorder %s926_s23, 1  ;;  %s926_s23 = sphi %s970_s23, %s16_s23   ;;  %s922_s22 = sphi %s968_s22, %s1071_s22   ;;  %s918_s21 = sphi %s966_s21, %s1070_s21  }
   0x3   : > { %p33_p1 = scmp.ge.s32.totalorder %s31_s24, 4  ;;  %p296_p2 = scmp.lt.s32.totalorder %s926_s23, 5 }
   0x5   : > { %s1073_s24 = smov (%p33_p1, %s31_s24), 0  ;;  %p297_p3 = pnand %p795_p0, %p296_p2 }
   0x6   : > { %p363_p4 = scmp.lt.s32.totalorder (!%p297_p3), %s918_s21, 3  ;;  %p403_p5 = scmp.eq.s32.totalorder (!%p297_p3), %s918_s21, 0 }
   0x7   : > { %300 = sbr.rel (%p297_p3) target bundleno = 468 (0x1d4), region = 44 }
   0xc   : > { %s989_s25 = scalar_select %p363_p4, %s918_s21, 3  ;;  %vm409_vm0 = vcmask (%p403_p5), 261120   ;;  %v928_v0 = vmov (%p403_p5), 0.0  }
   0xd   : > { %408 = sbr.rel (!%p403_p5) target bundleno = 18 (0x12), region = 48  ;;  %410 = vst.msk [vmem:[#allocation2] sm:$0xff] (%p403_p5), %vm409_vm0, %v928_v0  ;;  %411 = vst.msk [vmem:[#allocation2 + $0x8] sm:$0xff] (%p403_p5), %vm409_vm0, %v928_v0 }
   0xe   : > { %s819_s26 = sshll.u32 %s989_s25, 4  ;;  %s376_s29 = scalar_lea.vmem %s1065_s2, %s989_s25 }
   0xf   : > { %s370_s8 = scalar_lea.vmem %s1064_s1, %s819_s26  ;;  %s820_s9 = sshll.u32 %s989_s25, 6 }
  0x10   : > { %s1003_s12 = scalar_lea.vmem %s1066_s3, %s820_s9  ;;  %s389_s15 = scalar_lea.vmem %s1067_s4, %s989_s25 }
  0x12 PF: > { %v890_v1 = vld [vmem:[%s370_s8 + $0x8] sm:$0xff]   ;;  %v929_v2 = vmov 0.0   ;;  %v891_v3 = vld [vmem:[%s370_s8] sm:$0xff]   ;;  %vm930_vm1 = vmmov 0   ;;  %vm438_vm2 = vcmask 261120   ;;  %v892_v7 = vld [vmem:[%s1003_s12 + $0x38] sm:$0xff]   ;;  %v620_v15 = vlaneseq }
  0x13   : > { %835 = vmatprep.subr.bf16.mxu0 %v929_v2  ;;  %843 = vmatprep.subr.bf16.mxu1 %v929_v2  ;;  %v412_v4 = vld [vmem:[%s1063_s0] sm:$0xff]  ;;  %v413_v5 = vld [vmem:[%s1063_s0 + $0x8] sm:$0xff]  ;;  %v893_v8 = vld [vmem:[%s1003_s12 + $0x30] sm:$0xff]   ;;  %v622_v16 = vstv %s918_s21  ;;  %vm626_vm3 = vcmask 31744   ;;  %p641_p6 = scmp.eq.s32.totalorder %s918_s21, 3 }
  0x14   : > { %836 = vmatpush3.bf16.msra.mxu0 %v890_v1  ;;  %839 = vmatprep.mubr.msk.bf16.mxu0 %vm930_vm1, %v929_v2  ;;  %v414_v6 = vpack.c.bf16 %v413_v5, %v412_v4  ;;  %v894_v9 = vld [vmem:[%s1003_s12 + $0x28] sm:$0xff]   ;;  %v895_v10 = vld [vmem:[%s1003_s12 + $0x20] sm:$0xff]   ;;  %v896_v11 = vld [vmem:[%s1003_s12 + $0x18] sm:$0xff]   ;;  %v621_v18 = vand.u32 127, %v620_v15 }
  0x15   : > { %837 = vmatprep.subr.bf16.mxu0 %v929_v2  ;;  %859 = vmatprep.mubr.msk.bf16.mxu1 %vm930_vm1, %v929_v2  ;;  %v897_v12 = vld [vmem:[%s1003_s12 + $0x10] sm:$0xff]   ;;  %v898_v13 = vld [vmem:[%s1003_s12 + $0x8] sm:$0xff]   ;;  %v899_v14 = vld [vmem:[%s1003_s12] sm:$0xff]  }
  0x16   : > { %844 = vmatpush3.bf16.msra.mxu1 %v892_v7  ;;  %v618_v17 = vld [vmem:[%s1068_s5] sm:$0xff]  ;;  %v619_v19 = vld [vmem:[%s1068_s5 + $0x8] sm:$0xff]  ;;  %vm623_vm4 = vcmp.eq.s32.totalorder %v621_v18, %v622_v16 }
  0x17   : > { %845 = vmatprep.subr.bf16.mxu1 %v929_v2  ;;  %v624_v20 = vsel %vm623_vm4, %v618_v17, 0.0  ;;  %v625_v21 = vsel %vm623_vm4, %v619_v19, 0.0  ;;  %v801_v24 = vld [vmem:[%s376_s29] ss:$0 sm:$0xff]  ;;  %v634_v61 = vld [vmem:[#allocation2 + $0x8] sm:$0xff] }
  0x18   : > { %838 = vmatpush3.bf16.msra.mxu0 %v891_v3  ;;  %v627_v22 = vsel %vm626_vm3, %v624_v20, 0.0  ;;  %v630_v23 = vsel %vm626_vm3, %v625_v21, 0.0  ;;  %v805_v50 = vld [vmem:[%s389_s15] ss:$0 sm:$0xff] }
  0x19   : > { %628 = vadd.xlane.f32.xlu0 %v627_v22  ;;  %v633_v54 = vld [vmem:[#allocation2] sm:$0xff] }
  0x1a   : > { %846 = vmatpush3.bf16.msra.mxu1 %v893_v8 }
  0x1b   : > { %840 = vmatmul.mubr.msk.bf16.vlgmr.msra.gmra.mxu0 %vm438_vm2, %v414_v6  ;;  %847 = vmatprep.subr.bf16.mxu1 %v929_v2 }
  0x1d   : > { %631 = vadd.xlane.f32.xlu0 %v630_v23 }
  0x1e   : > { %848 = vmatpush3.bf16.msra.mxu1 %v894_v9 }
  0x1f   : > { %849 = vmatprep.subr.bf16.mxu1 %v929_v2 }
  0x22   : > { %850 = vmatpush3.bf16.msra.mxu1 %v895_v10 }
  0x23   : > { %851 = vmatprep.subr.bf16.mxu1 %v929_v2 }
  0x26   : > { %852 = vmatpush3.bf16.msra.mxu1 %v896_v11 }
  0x27   : > { %853 = vmatprep.subr.bf16.mxu1 %v929_v2 }
  0x2a   : > { %854 = vmatpush3.bf16.msra.mxu1 %v897_v12 }
  0x2b   : > { %855 = vmatprep.subr.bf16.mxu1 %v929_v2 }
  0x2e   : > { %856 = vmatpush3.bf16.msra.mxu1 %v898_v13 }
  0x2f   : > { %857 = vmatprep.subr.bf16.mxu1 %v929_v2 }
  0x32   : > { %858 = vmatpush3.bf16.msra.mxu1 %v899_v14 }
  0xa2   : > { %v629_v51 = vpop.xlane.xlu0 %628 }
  0xa6   : > { %v632_v58 = vpop.xlane.xlu0 %631 }
  0xdb   : > { %v476_v25 = vpop.f32.mrf.mxu0 }
  0xdc   : > { %v477_v26 = vadd.f32 %v801_v24, %v476_v25 }
  0xdd   : > { %v841_v27 = vpop.f32.mrf.mxu0 }
  0xde   : > { %v485_v28 = vmul.f32 0.044715, %v477_v26  ;;  %v483_v44 = vmul.f32 0.5, %v477_v26 }
  0xdf   : > { %v479_v29 = vpop.f32.mrf.mxu0 }
  0xe0   : > { %v487_v30 = vmul.f32 %v485_v28, %v477_v26  ;;  %v480_v31 = vadd.f32 %v801_v24, %v479_v29 }
  0xe1   : > { %v842_v32 = vpop.f32.mrf.mxu0 }
  0xe2   : > { %v489_v33 = vmul.f32 %v487_v30, %v477_v26  ;;  %v486_v34 = vmul.f32 0.044715, %v480_v31  ;;  %v484_v45 = vmul.f32 0.5, %v480_v31 }
  0xe4   : > { %v488_v35 = vmul.f32 %v486_v34, %v480_v31  ;;  %v491_v36 = vadd.f32 %v489_v33, %v477_v26 }
  0xe6   : > { %v490_v37 = vmul.f32 %v488_v35, %v480_v31  ;;  %v493_v38 = vmul.f32 0.7978846, %v491_v36 }
  0xe8   : > { %v492_v39 = vadd.f32 %v490_v37, %v480_v31  ;;  %900 = vtanh.f32 %v493_v38 }
  0xea   : > { %v494_v40 = vmul.f32 0.7978846, %v492_v39 }
  0xec   : > { %902 = vtanh.f32 %v494_v40 }
  0xf5   : > { %v901_v41 = vpop.eup %900 }
  0xf6   : > { %v497_v42 = vadd.f32 1.0, %v901_v41 }
  0xf8   : > { %v499_v47 = vmul.f32 %v497_v42, %v483_v44 }
  0xf9   : > { %v903_v43 = vpop.eup %902 }
  0xfa   : > { %v498_v46 = vadd.f32 1.0, %v903_v43 }
  0xfc   : > { %v500_v48 = vmul.f32 %v498_v46, %v484_v45 }
  0xfe   : > { %v501_v49 = vpack.c.bf16 %v500_v48, %v499_v47 }
 0x100   : > { %860 = vmatmul.mubr.bf16.vlgmr.msra.gmra.mxu1 %v501_v49 }
 0x1c0   : > { %v611_v52 = vpop.f32.mrf.mxu1 }
 0x1c1   : > { %v612_v53 = vadd.f32 %v805_v50, %v611_v52 }
 0x1c2   : > { %v861_v55 = vpop.f32.mrf.mxu1 }
 0x1c3   : > { %v635_v56 = vmul.f32 %v629_v51, %v612_v53 }
 0x1c4   : > { %v614_v57 = vpop.f32.mrf.mxu1 }
 0x1c5   : > { %v637_v59 = vadd.f32 %v635_v56, %v633_v54  ;;  %v615_v60 = vadd.f32 %v805_v50, %v614_v57 }
 0x1c6   : > { %v862_v62 = vpop.f32.mrf.mxu1 }
 0x1c7   : > { %639 = vst.msk [vmem:[#allocation2] sm:$0xff] %vm438_vm2, %v637_v59  ;;  %v636_v63 = vmul.f32 %v632_v58, %v615_v60  ;;  %645 = sbr.rel (!%p641_p6) target bundleno = 468 (0x1d4), region = 52 }
 0x1c9   : > { %v638_v0 = vadd.f32 %v636_v63, %v634_v61 }
 0x1cb   : > { %640 = vst.msk [vmem:[#allocation2 + $0x8] sm:$0xff] %vm438_vm2, %v638_v0 }
 0x1ce   : > { %v646_v1 = vld [vmem:[#allocation2] sm:$0xff] }
 0x1cf   : > { %648 = vst.msk [vmem:[%s1069_s6] sm:$0xff] %vm438_vm2, %v646_v1 }
 0x1d2   : > { %v647_v2 = vld [vmem:[#allocation2 + $0x8] sm:$0xff] }
 0x1d3   : > { %649 = vst.msk [vmem:[%s1069_s6 + $0x8] sm:$0xff] %vm438_vm2, %v647_v2 }
 0x1d4 PF: > { %s16_s23 = sadd.s32 1, %s926_s23   ;;  %s1070_s21 = smov %s922_s22 }
 0x1d5   : > { %p13_p7 = scmp.ge.s32.totalorder %s16_s23, 6   ;;  %s1071_s22 = smov %s1073_s24 }
 0x1d7   :  { %15 = sbr.rel (!%p13_p7) target bundleno = 2 (0x2), region = 97 }

</bundles_post_ra>
